<compile_context>
chip_gen: v6e
topology: v6e:2x2x1
jax: 0.10.0
libtpu: 0.0.40
codegen_flags: <defaults>
</compile_context>

<pallas_src>
import jax
import jax.numpy as jnp
import numpy as np
from jax import lax
from jax.experimental import pallas as pl
from jax.experimental.pallas import tpu as pltpu

EPS = 1e-5      # nn.BatchNorm2d default eps
SLOPE = 0.3     # nn.LeakyReLU(negative_slope=0.3)
HALO = 8        # sublane-aligned halo rows above/below the conv scratch


def _make_kernel(B, H, W, Cin, Cout, first):
  BH = B * H
  Win = W * Cin
  Wout = W * Cout
  H2, W2 = H // 2, W // 2
  inv_n = 1.0 / float(B * H * W)

  def lrelu(v):
    return jnp.where(v > 0, v, SLOPE * v)

  def bn_lrelu(v, t_ref, g_row, be_row):
    # v: (BH, W*C) f32.  Training-mode BN over (B,H,W) per channel:
    # sublane sum + sum-of-squares, then one tiny f32 matmul against
    # T[i,j] = [i%C == j%C] gives per-channel stats already tiled across the
    # W lane blocks (broadcasts straight back onto the slab, no reshapes).
    s1 = jnp.sum(v, axis=0, keepdims=True)
    q1 = jnp.sum(v * v, axis=0, keepdims=True)
    mean = jnp.dot(s1, t_ref[...], preferred_element_type=jnp.float32) * inv_n
    ex2 = jnp.dot(q1, t_ref[...], preferred_element_type=jnp.float32) * inv_n
    var = jnp.maximum(ex2 - mean * mean, 0.0)   # clamp: E[x^2]-E[x]^2 can dip <0
    scale = g_row * lax.rsqrt(var + EPS)
    shift = be_row - mean * scale
    return lrelu(v * scale + shift)

  def kernel(x_ref, m1_ref, m2_ref, md_ref,
             b1_ref, b2_ref, bd_ref,
             g1_ref, be1_ref, g2_ref, be2_ref,
             tin_ref, tout_ref,
             out_ref,
             a1buf, a2buf, poolbuf):
    x = x_ref[...]                                        # (BH, W*Cin) f32

    # Row-boundary masks for the dh = +/-1 shifted conv operands (rows whose
    # neighbour row belongs to another image / the zero halo).  (BH, 1) bools,
    # computed once and shared by both convolutions.
    h_idx = lax.broadcasted_iota(jnp.int32, (BH, 1), 0) % H
    mask_up = h_idx >= 1            # row r-1 is inside the same image
    mask_dn = h_idx <= H - 2        # row r+1 is inside the same image

    # Zero ONLY the halo rows (the shifted reads touch one row on each side).
    zin = jnp.zeros((HALO, Win), jnp.bfloat16)
    zout = jnp.zeros((HALO, Wout), jnp.bfloat16)
    a1buf[pl.ds(0, HALO), :] = zin
    a1buf[pl.ds(HALO + BH, HALO), :] = zin
    a2buf[pl.ds(0, HALO), :] = zout
    a2buf[pl.ds(HALO + BH, HALO), :] = zout

    def conv3x3(center_bf, buf, m_ref, b_row):
      # Three accumulating matmuls against the host-built banded weights; the
      # dw taps and w-boundary zero padding live inside m_ref, only the image
      # row boundary needs the (BH,1) masks.
      up = jnp.where(mask_up, buf[pl.ds(HALO - 1, BH), :], 0)   # rows r-1
      dn = jnp.where(mask_dn, buf[pl.ds(HALO + 1, BH), :], 0)   # rows r+1
      acc = jnp.dot(up, m_ref[0], preferred_element_type=jnp.float32)
      acc = acc + jnp.dot(center_bf, m_ref[1],
                          preferred_element_type=jnp.float32)
      acc = acc + jnp.dot(dn, m_ref[2], preferred_element_type=jnp.float32)
      return acc + b_row

    # --- main path ---------------------------------------------------------
    a1 = x if first else bn_lrelu(x, tin_ref, g1_ref[...], be1_ref[...])
    a1_bf = a1.astype(jnp.bfloat16)
    a1buf[pl.ds(HALO, BH), :] = a1_bf
    c1 = conv3x3(a1_bf, a1buf, m1_ref, b1_ref[...])       # (BH, W*Cout) f32

    a2 = bn_lrelu(c1, tout_ref, g2_ref[...], be2_ref[...])
    a2_bf = a2.astype(jnp.bfloat16)
    a2buf[pl.ds(HALO, BH), :] = a2_bf
    c2 = conv3x3(a2_bf, a2buf, m2_ref, b2_ref[...])       # even|odd w order

    # --- identity path (1x1 conv if downsample, block permutation else) -----
    identity = (jnp.dot(x, md_ref[...], preferred_element_type=jnp.float32)
                + bd_ref[...])                            # even|odd w order

    s = c2 + identity                                     # (BH, W*Cout) f32

    # --- 2x2 max pool --------------------------------------------------------
    # One store of s, two stride-2 sublane reads (even/odd image rows; H is
    # even so pairs never cross images), then a max of the two lane halves
    # (even-w vs odd-w blocks thanks to the output column permutation).
    poolbuf[...] = s
    rowmax = jnp.maximum(poolbuf[pl.ds(0, B * H2, stride=2), :],
                         poolbuf[pl.ds(1, B * H2, stride=2), :])
    pooled = jnp.maximum(rowmax[:, :W2 * Cout], rowmax[:, W2 * Cout:])
    out_ref[...] = pooled                                 # single dense store

  return kernel


def _band_matrices(w9, W, Ci, Co, order, dtype):
  """Banded conv weights: M[dh][(w+dw)*Ci+ci, j*Co+co] = K[dh,dw,ci,co],
  with output block j holding image column order[j].  Shape (3, W*Ci, W*Co)."""
  k = w9.reshape(3, 3, Ci, Co).astype(jnp.float32)        # (dh, dw, Ci, Co)
  o = np.asarray(order)
  wi = np.arange(W)
  place = np.stack([(wi[:, None] == (o[None, :] + dw)).astype(np.float32)
                    for dw in (-1, 0, 1)], 0)             # (dw, w_in, j)
  m = jnp.einsum('dxj,hdio->hxijo', jnp.asarray(place), k)
  return m.reshape(3, W * Ci, W * Co).astype(dtype)


def _block_matrix(wd, W, Ci, Co, order, dtype):
  """Block matrix for the 1x1 path: Md[w*Ci+ci, j*Co+co] = wd[ci,co] iff
  w == order[j]."""
  sel = (np.arange(W)[:, None] == np.asarray(order)[None, :]).astype(np.float32)
  m = jnp.einsum('xj,io->xijo', jnp.asarray(sel), wd.astype(jnp.float32))
  return m.reshape(W * Ci, W * Co).astype(dtype)


def residual_block2d(x_nchw, params, *, first=False):
  B, Cin, H, W = x_nchw.shape
  Cout = params["w1"].shape[-1]
  downsample = Cin != Cout
  assert H % 2 == 0 and W % 2 == 0, "MaxPool2d(2) assumes even H and W"
  H2, W2 = H // 2, W // 2
  BH = B * H
  Win, Wout = W * Cin, W * Cout

  # NCHW -> lane-dense (B*H, W*Cin) slab (row = (b,h), lane = w*Cin + c).
  x_slab = jnp.transpose(x_nchw, (0, 2, 3, 1)).reshape(BH, Win)
  x_slab = x_slab.astype(jnp.float32)

  natural = np.arange(W)
  # conv2 / downsample outputs emit even-w blocks first, then odd-w blocks,
  # so the w-pool becomes a max of the two lane halves.
  perm = np.concatenate([np.arange(0, W, 2), np.arange(1, W, 2)])

  m1 = _band_matrices(params["w1"], W, Cin, Cout, natural, jnp.bfloat16)
  m2 = _band_matrices(params["w2"], W, Cout, Cout, perm, jnp.bfloat16)
  if downsample:
    md = _block_matrix(params["wd"], W, Cin, Cout, perm, jnp.float32)
    bd_row = jnp.tile(params["bd"].reshape(1, Cout), (1, W))
  else:
    md = _block_matrix(jnp.eye(Cin, dtype=jnp.float32), W, Cin, Cout, perm,
                       jnp.float32)
    bd_row = jnp.zeros((1, Wout), jnp.float32)

  b1_row = jnp.tile(params["b1"].reshape(1, Cout), (1, W))
  b2_row = jnp.tile(params["b2"].reshape(1, Cout), (1, W))
  g1_row = jnp.tile(params["g1"].reshape(1, Cin), (1, W))
  be1_row = jnp.tile(params["be1"].reshape(1, Cin), (1, W))
  g2_row = jnp.tile(params["g2"].reshape(1, Cout), (1, W))
  be2_row = jnp.tile(params["be2"].reshape(1, Cout), (1, W))
  t_in = jnp.asarray(np.tile(np.eye(Cin, dtype=np.float32), (W, W)))
  t_out = jnp.asarray(np.tile(np.eye(Cout, dtype=np.float32), (W, W)))

  kernel = _make_kernel(B, H, W, Cin, Cout, first)
  vmem = pl.BlockSpec(memory_space=pltpu.MemorySpace.VMEM)
  args = (x_slab, m1, m2, md, b1_row, b2_row, bd_row,
          g1_row, be1_row, g2_row, be2_row, t_in, t_out)
  pooled = pl.pallas_call(
      kernel,
      out_shape=jax.ShapeDtypeStruct((B * H2, W2 * Cout), jnp.float32),
      in_specs=[vmem] * len(args),
      out_specs=vmem,
      scratch_shapes=[pltpu.VMEM((2 * HALO + BH, Win), jnp.bfloat16),
                      pltpu.VMEM((2 * HALO + BH, Wout), jnp.bfloat16),
                      pltpu.VMEM((BH, Wout), jnp.float32)],
      compiler_params=pltpu.CompilerParams(vmem_limit_bytes=64 * 1024 * 1024),
  )(*args)
  return pooled.reshape(B, H2, W2, Cout).transpose(0, 3, 1, 2)


def make_params(key, Cin, Cout):
  ks = jax.random.split(key, 10)
  return {
      # conv weights stored as (kh*kw, Cin, Cout) (HWIO flattened over taps)
      "w1": 0.1 * jax.random.normal(ks[0], (9, Cin, Cout), jnp.float32),
      "b1": 0.1 * jax.random.normal(ks[1], (1, Cout), jnp.float32),
      "w2": 0.1 * jax.random.normal(ks[2], (9, Cout, Cout), jnp.float32),
      "b2": 0.1 * jax.random.normal(ks[3], (1, Cout), jnp.float32),
      "wd": 0.1 * jax.random.normal(ks[4], (Cin, Cout), jnp.float32),
      "bd": 0.1 * jax.random.normal(ks[5], (1, Cout), jnp.float32),
      "g1": 1.0 + 0.1 * jax.random.normal(ks[6], (1, Cin), jnp.float32),
      "be1": 0.1 * jax.random.normal(ks[7], (1, Cin), jnp.float32),
      "g2": 1.0 + 0.1 * jax.random.normal(ks[8], (1, Cout), jnp.float32),
      "be2": 0.1 * jax.random.normal(ks[9], (1, Cout), jnp.float32),
  }


def reference_forward(x_nchw, p, *, first=False):
  """Pure-JAX reference with identical semantics (NHWC internally, f32)."""
  B, Cin, H, W = x_nchw.shape
  Cout = p["w1"].shape[-1]
  x = jnp.transpose(x_nchw, (0, 2, 3, 1)).astype(jnp.float32)

  def lrelu(v):
    return jnp.where(v > 0, v, SLOPE * v)

  def bn(v, g, b):
    m = v.mean(axis=(0, 1, 2), keepdims=True)
    var = ((v - m) ** 2).mean(axis=(0, 1, 2), keepdims=True)
    return (v - m) * lax.rsqrt(var + EPS) * g + b

  def conv3(v, w9, b):
    w = w9.reshape(3, 3, w9.shape[1], w9.shape[2])
    y = lax.conv_general_dilated(
        v, w, window_strides=(1, 1), padding=((1, 1), (1, 1)),
        dimension_numbers=("NHWC", "HWIO", "NHWC"))
    return y + b

  out = x if first else lrelu(bn(x, p["g1"], p["be1"]))
  out = conv3(out, p["w1"], p["b1"])
  out = lrelu(bn(out, p["g2"], p["be2"]))
  out = conv3(out, p["w2"], p["b2"])
  identity = x @ p["wd"] + p["bd"] if Cin != Cout else x
  s = out + identity
  s = s.reshape(B, H // 2, 2, W // 2, 2, Cout).max(axis=(2, 4))
  return jnp.transpose(s, (0, 3, 1, 2))


if __name__ == "__main__":
  key = jax.random.PRNGKey(0)
  kx, kp = jax.random.split(key)
  # nb_filts = [4, 8]  -> downsample (1x1 conv) path is exercised; first=False
  B, Cin, Cout, H, W = 2, 4, 8, 16, 16
  x = jax.random.normal(kx, (B, Cin, H, W), jnp.float32)
  params = make_params(kp, Cin, Cout)

  out = jax.block_until_ready(residual_block2d(x, params, first=False))
  assert out.shape == (B, Cout, H // 2, W // 2), out.shape

  ref = jax.block_until_ready(reference_forward(x, params, first=False))
  if not jnp.allclose(out, ref, rtol=3e-2, atol=3e-2):
    raise AssertionError(
        f"mismatch vs reference, max abs err = {jnp.max(jnp.abs(out - ref))}")
  print("KERNEL_OK")
</pallas_src>

<mosaic_0001>
module attributes {stable_mosaic.version = 11 : i64} {
  func.func @kernel(%arg0: memref<32x64xf32, #tpu.memory_space<vmem>>, %arg1: memref<3x64x128xbf16, #tpu.memory_space<vmem>>, %arg2: memref<3x128x128xbf16, #tpu.memory_space<vmem>>, %arg3: memref<64x128xf32, #tpu.memory_space<vmem>>, %arg4: memref<1x128xf32, #tpu.memory_space<vmem>>, %arg5: memref<1x128xf32, #tpu.memory_space<vmem>>, %arg6: memref<1x128xf32, #tpu.memory_space<vmem>>, %arg7: memref<1x64xf32, #tpu.memory_space<vmem>>, %arg8: memref<1x64xf32, #tpu.memory_space<vmem>>, %arg9: memref<1x128xf32, #tpu.memory_space<vmem>>, %arg10: memref<1x128xf32, #tpu.memory_space<vmem>>, %arg11: memref<64x64xf32, #tpu.memory_space<vmem>>, %arg12: memref<128x128xf32, #tpu.memory_space<vmem>>, %arg13: memref<16x64xf32, #tpu.memory_space<vmem>>, %arg14: memref<48x64xbf16, #tpu.memory_space<vmem>>, %arg15: memref<48x128xbf16, #tpu.memory_space<vmem>>, %arg16: memref<32x128xf32, #tpu.memory_space<vmem>>) attributes {dimension_semantics = [], scalar_prefetch = 0 : i64, scratch_operands = 3 : i64, tpu.core_type = #tpu.core_type<tc>} {
    %c0 = arith.constant 0 : index
    %c0_0 = arith.constant 0 : index
    %0 = vector.load %arg0[%c0, %c0_0] : memref<32x64xf32, #tpu.memory_space<vmem>>, vector<32x64xf32>
    %1 = tpu.iota {dimensions = array<i32: 0>} : vector<32x1xi32>
    %c16_i32 = arith.constant 16 : i32
    %c0_i32 = arith.constant 0 : i32
    %2 = arith.cmpi eq, %c16_i32, %c0_i32 : i32
    %c1_i32 = arith.constant 1 : i32
    %3 = arith.select %2, %c1_i32, %c16_i32 : i32
    %4 = vector.broadcast %3 : i32 to vector<32x1xi32>
    %5 = arith.remsi %1, %4 : vector<32x1xi32>
    %c0_i32_1 = arith.constant 0 : i32
    %6 = vector.broadcast %c0_i32_1 : i32 to vector<32x1xi32>
    %7 = arith.cmpi ne, %5, %6 : vector<32x1xi32>
    %c0_i32_2 = arith.constant 0 : i32
    %8 = vector.broadcast %c0_i32_2 : i32 to vector<32x1xi32>
    %9 = arith.cmpi slt, %5, %8 : vector<32x1xi32>
    %c0_i32_3 = arith.constant 0 : i32
    %10 = arith.cmpi slt, %3, %c0_i32_3 : i32
    %11 = vector.broadcast %10 : i1 to vector<32x1xi1>
    %12 = vector.broadcast %11 : vector<32x1xi1> to vector<32x1xi1>
    %13 = arith.xori %9, %12 : vector<32x1xi1>
    %14 = arith.andi %13, %7 : vector<32x1xi1>
    %15 = vector.broadcast %3 : i32 to vector<32x1xi32>
    %16 = arith.addi %5, %15 : vector<32x1xi32>
    %17 = arith.select %14, %16, %5 : vector<32x1xi1>, vector<32x1xi32>
    %c1_i32_4 = arith.constant 1 : i32
    %18 = vector.broadcast %c1_i32_4 : i32 to vector<32x1xi32>
    %19 = arith.cmpi sge, %17, %18 : vector<32x1xi32>
    %c14_i32 = arith.constant 14 : i32
    %20 = vector.broadcast %c14_i32 : i32 to vector<32x1xi32>
    %21 = arith.cmpi sle, %17, %20 : vector<32x1xi32>
    %cst = arith.constant 0.000000e+00 : bf16
    %22 = vector.broadcast %cst : bf16 to vector<8x64xbf16>
    %cst_5 = arith.constant 0.000000e+00 : bf16
    %23 = vector.broadcast %cst_5 : bf16 to vector<8x128xbf16>
    %c0_6 = arith.constant 0 : index
    %c0_7 = arith.constant 0 : index
    %24 = vector.load %arg14[%c0_6, %c0_7] : memref<48x64xbf16, #tpu.memory_space<vmem>>, vector<8x64xbf16>
    tpu.vector_store %arg14[%c0_6, %c0_7], %22 {strides = array<i32>} : memref<48x64xbf16, #tpu.memory_space<vmem>>, vector<8x64xbf16>,
    %c40 = arith.constant 40 : index
    %c0_8 = arith.constant 0 : index
    %25 = vector.load %arg14[%c40, %c0_8] : memref<48x64xbf16, #tpu.memory_space<vmem>>, vector<8x64xbf16>
    tpu.vector_store %arg14[%c40, %c0_8], %22 {strides = array<i32>} : memref<48x64xbf16, #tpu.memory_space<vmem>>, vector<8x64xbf16>,
    %c0_9 = arith.constant 0 : index
    %c0_10 = arith.constant 0 : index
    %26 = vector.load %arg15[%c0_9, %c0_10] : memref<48x128xbf16, #tpu.memory_space<vmem>>, vector<8x128xbf16>
    tpu.vector_store %arg15[%c0_9, %c0_10], %23 {strides = array<i32>} : memref<48x128xbf16, #tpu.memory_space<vmem>>, vector<8x128xbf16>,
    %c40_11 = arith.constant 40 : index
    %c0_12 = arith.constant 0 : index
    %27 = vector.load %arg15[%c40_11, %c0_12] : memref<48x128xbf16, #tpu.memory_space<vmem>>, vector<8x128xbf16>
    tpu.vector_store %arg15[%c40_11, %c0_12], %23 {strides = array<i32>} : memref<48x128xbf16, #tpu.memory_space<vmem>>, vector<8x128xbf16>,
    %c0_13 = arith.constant 0 : index
    %c0_14 = arith.constant 0 : index
    %28 = vector.load %arg7[%c0_13, %c0_14] : memref<1x64xf32, #tpu.memory_space<vmem>>, vector<1x64xf32>
    %c0_15 = arith.constant 0 : index
    %c0_16 = arith.constant 0 : index
    %29 = vector.load %arg8[%c0_15, %c0_16] : memref<1x64xf32, #tpu.memory_space<vmem>>, vector<1x64xf32>
    %cst_17 = arith.constant dense<0.000000e+00> : vector<64xf32>
    %30 = vector.multi_reduction <add>, %0, %cst_17 [0] : vector<32x64xf32> to vector<64xf32>
    %31 = vector.shape_cast %30 : vector<64xf32> to vector<1x64xf32>
    %32 = arith.mulf %0, %0 : vector<32x64xf32>
    %cst_18 = arith.constant dense<0.000000e+00> : vector<64xf32>
    %33 = vector.multi_reduction <add>, %32, %cst_18 [0] : vector<32x64xf32> to vector<64xf32>
    %34 = vector.shape_cast %33 : vector<64xf32> to vector<1x64xf32>
    %c0_19 = arith.constant 0 : index
    %c0_20 = arith.constant 0 : index
    %35 = vector.load %arg11[%c0_19, %c0_20] : memref<64x64xf32, #tpu.memory_space<vmem>>, vector<64x64xf32>
    %cst_21 = arith.constant dense<0.000000e+00> : vector<1x64xf32>
    %36 = tpu.matmul %31, %35, %cst_21 {dimension_numbers = #tpu.dot_dimension_numbers<[1], [0], [0], [1], [0, 0, 1, 1], [], []>} : vector<1x64xf32>, vector<64x64xf32>, vector<1x64xf32> -> vector<1x64xf32>
    %cst_22 = arith.constant 0.001953125 : f32
    %37 = vector.broadcast %cst_22 : f32 to vector<1x64xf32>
    %38 = arith.mulf %36, %37 : vector<1x64xf32>
    %c0_23 = arith.constant 0 : index
    %c0_24 = arith.constant 0 : index
    %39 = vector.load %arg11[%c0_23, %c0_24] : memref<64x64xf32, #tpu.memory_space<vmem>>, vector<64x64xf32>
    %cst_25 = arith.constant dense<0.000000e+00> : vector<1x64xf32>
    %40 = tpu.matmul %34, %39, %cst_25 {dimension_numbers = #tpu.dot_dimension_numbers<[1], [0], [0], [1], [0, 0, 1, 1], [], []>} : vector<1x64xf32>, vector<64x64xf32>, vector<1x64xf32> -> vector<1x64xf32>
    %cst_26 = arith.constant 0.001953125 : f32
    %41 = vector.broadcast %cst_26 : f32 to vector<1x64xf32>
    %42 = arith.mulf %40, %41 : vector<1x64xf32>
    %43 = arith.mulf %38, %38 : vector<1x64xf32>
    %44 = arith.subf %42, %43 : vector<1x64xf32>
    %cst_27 = arith.constant 0.000000e+00 : f32
    %45 = vector.broadcast %cst_27 : f32 to vector<1x64xf32>
    %46 = arith.maximumf %44, %45 : vector<1x64xf32>
    %cst_28 = arith.constant 9.99999974E-6 : f32
    %47 = vector.broadcast %cst_28 : f32 to vector<1x64xf32>
    %48 = arith.addf %46, %47 : vector<1x64xf32>
    %49 = math.rsqrt %48 : vector<1x64xf32>
    %50 = arith.mulf %28, %49 : vector<1x64xf32>
    %51 = arith.mulf %38, %50 : vector<1x64xf32>
    %52 = arith.subf %29, %51 : vector<1x64xf32>
    %53 = vector.broadcast %50 : vector<1x64xf32> to vector<32x64xf32>
    %54 = arith.mulf %0, %53 : vector<32x64xf32>
    %55 = vector.broadcast %52 : vector<1x64xf32> to vector<32x64xf32>
    %56 = arith.addf %54, %55 : vector<32x64xf32>
    %cst_29 = arith.constant 0.000000e+00 : f32
    %57 = vector.broadcast %cst_29 : f32 to vector<32x64xf32>
    %58 = arith.cmpf ogt, %56, %57 : vector<32x64xf32>
    %cst_30 = arith.constant 3.000000e-01 : f32
    %59 = vector.broadcast %cst_30 : f32 to vector<32x64xf32>
    %60 = arith.mulf %59, %56 : vector<32x64xf32>
    %61 = arith.select %58, %56, %60 : vector<32x64xi1>, vector<32x64xf32>
    %62 = arith.truncf %61 : vector<32x64xf32> to vector<32x64xbf16>
    %c8 = arith.constant 8 : index
    %c0_31 = arith.constant 0 : index
    %63 = vector.load %arg14[%c8, %c0_31] : memref<48x64xbf16, #tpu.memory_space<vmem>>, vector<32x64xbf16>
    tpu.vector_store %arg14[%c8, %c0_31], %62 {strides = array<i32>} : memref<48x64xbf16, #tpu.memory_space<vmem>>, vector<32x64xbf16>,
    %c0_32 = arith.constant 0 : index
    %c0_33 = arith.constant 0 : index
    %64 = vector.load %arg4[%c0_32, %c0_33] : memref<1x128xf32, #tpu.memory_space<vmem>>, vector<1x128xf32>
    %c7 = arith.constant 7 : index
    %c0_34 = arith.constant 0 : index
    %65 = vector.load %arg14[%c7, %c0_34] : memref<48x64xbf16, #tpu.memory_space<vmem>>, vector<32x64xbf16>
    %c0_i32_35 = arith.constant 0 : i32
    %66 = arith.sitofp %c0_i32_35 : i32 to bf16
    %67 = vector.shape_cast %19 : vector<32x1xi1> to vector<32x1xi1>
    %68 = vector.broadcast %67 : vector<32x1xi1> to vector<32x64xi1>
    %69 = vector.broadcast %66 : bf16 to vector<32x64xbf16>
    %70 = arith.select %68, %65, %69 : vector<32x64xi1>, vector<32x64xbf16>
    %c9 = arith.constant 9 : index
    %c0_36 = arith.constant 0 : index
    %71 = vector.load %arg14[%c9, %c0_36] : memref<48x64xbf16, #tpu.memory_space<vmem>>, vector<32x64xbf16>
    %c0_i32_37 = arith.constant 0 : i32
    %72 = arith.sitofp %c0_i32_37 : i32 to bf16
    %73 = vector.shape_cast %21 : vector<32x1xi1> to vector<32x1xi1>
    %74 = vector.broadcast %73 : vector<32x1xi1> to vector<32x64xi1>
    %75 = vector.broadcast %72 : bf16 to vector<32x64xbf16>
    %76 = arith.select %74, %71, %75 : vector<32x64xi1>, vector<32x64xbf16>
    %c0_38 = arith.constant 0 : index
    %c0_39 = arith.constant 0 : index
    %c0_40 = arith.constant 0 : index
    %77 = vector.load %arg1[%c0_38, %c0_39, %c0_40] : memref<3x64x128xbf16, #tpu.memory_space<vmem>>, vector<1x64x128xbf16>
    %78 = vector.shape_cast %77 : vector<1x64x128xbf16> to vector<64x128xbf16>
    %cst_41 = arith.constant dense<0.000000e+00> : vector<32x128xf32>
    %79 = tpu.matmul %70, %78, %cst_41 {dimension_numbers = #tpu.dot_dimension_numbers<[1], [0], [0], [1], [0, 0, 1, 1], [], []>} : vector<32x64xbf16>, vector<64x128xbf16>, vector<32x128xf32> -> vector<32x128xf32>
    %c1 = arith.constant 1 : index
    %c0_42 = arith.constant 0 : index
    %c0_43 = arith.constant 0 : index
    %80 = vector.load %arg1[%c1, %c0_42, %c0_43] : memref<3x64x128xbf16, #tpu.memory_space<vmem>>, vector<1x64x128xbf16>
    %81 = vector.shape_cast %80 : vector<1x64x128xbf16> to vector<64x128xbf16>
    %cst_44 = arith.constant dense<0.000000e+00> : vector<32x128xf32>
    %82 = tpu.matmul %62, %81, %cst_44 {dimension_numbers = #tpu.dot_dimension_numbers<[1], [0], [0], [1], [0, 0, 1, 1], [], []>} : vector<32x64xbf16>, vector<64x128xbf16>, vector<32x128xf32> -> vector<32x128xf32>
    %83 = arith.addf %79, %82 : vector<32x128xf32>
    %c2 = arith.constant 2 : index
    %c0_45 = arith.constant 0 : index
    %c0_46 = arith.constant 0 : index
    %84 = vector.load %arg1[%c2, %c0_45, %c0_46] : memref<3x64x128xbf16, #tpu.memory_space<vmem>>, vector<1x64x128xbf16>
    %85 = vector.shape_cast %84 : vector<1x64x128xbf16> to vector<64x128xbf16>
    %cst_47 = arith.constant dense<0.000000e+00> : vector<32x128xf32>
    %86 = tpu.matmul %76, %85, %cst_47 {dimension_numbers = #tpu.dot_dimension_numbers<[1], [0], [0], [1], [0, 0, 1, 1], [], []>} : vector<32x64xbf16>, vector<64x128xbf16>, vector<32x128xf32> -> vector<32x128xf32>
    %87 = arith.addf %83, %86 : vector<32x128xf32>
    %88 = vector.broadcast %64 : vector<1x128xf32> to vector<32x128xf32>
    %89 = arith.addf %87, %88 : vector<32x128xf32>
    %c0_48 = arith.constant 0 : index
    %c0_49 = arith.constant 0 : index
    %90 = vector.load %arg9[%c0_48, %c0_49] : memref<1x128xf32, #tpu.memory_space<vmem>>, vector<1x128xf32>
    %c0_50 = arith.constant 0 : index
    %c0_51 = arith.constant 0 : index
    %91 = vector.load %arg10[%c0_50, %c0_51] : memref<1x128xf32, #tpu.memory_space<vmem>>, vector<1x128xf32>
    %cst_52 = arith.constant dense<0.000000e+00> : vector<128xf32>
    %92 = vector.multi_reduction <add>, %89, %cst_52 [0] : vector<32x128xf32> to vector<128xf32>
    %93 = vector.shape_cast %92 : vector<128xf32> to vector<1x128xf32>
    %94 = arith.mulf %89, %89 : vector<32x128xf32>
    %cst_53 = arith.constant dense<0.000000e+00> : vector<128xf32>
    %95 = vector.multi_reduction <add>, %94, %cst_53 [0] : vector<32x128xf32> to vector<128xf32>
    %96 = vector.shape_cast %95 : vector<128xf32> to vector<1x128xf32>
    %c0_54 = arith.constant 0 : index
    %c0_55 = arith.constant 0 : index
    %97 = vector.load %arg12[%c0_54, %c0_55] : memref<128x128xf32, #tpu.memory_space<vmem>>, vector<128x128xf32>
    %cst_56 = arith.constant dense<0.000000e+00> : vector<1x128xf32>
    %98 = tpu.matmul %93, %97, %cst_56 {dimension_numbers = #tpu.dot_dimension_numbers<[1], [0], [0], [1], [0, 0, 1, 1], [], []>} : vector<1x128xf32>, vector<128x128xf32>, vector<1x128xf32> -> vector<1x128xf32>
    %cst_57 = arith.constant 0.001953125 : f32
    %99 = vector.broadcast %cst_57 : f32 to vector<1x128xf32>
    %100 = arith.mulf %98, %99 : vector<1x128xf32>
    %c0_58 = arith.constant 0 : index
    %c0_59 = arith.constant 0 : index
    %101 = vector.load %arg12[%c0_58, %c0_59] : memref<128x128xf32, #tpu.memory_space<vmem>>, vector<128x128xf32>
    %cst_60 = arith.constant dense<0.000000e+00> : vector<1x128xf32>
    %102 = tpu.matmul %96, %101, %cst_60 {dimension_numbers = #tpu.dot_dimension_numbers<[1], [0], [0], [1], [0, 0, 1, 1], [], []>} : vector<1x128xf32>, vector<128x128xf32>, vector<1x128xf32> -> vector<1x128xf32>
    %cst_61 = arith.constant 0.001953125 : f32
    %103 = vector.broadcast %cst_61 : f32 to vector<1x128xf32>
    %104 = arith.mulf %102, %103 : vector<1x128xf32>
    %105 = arith.mulf %100, %100 : vector<1x128xf32>
    %106 = arith.subf %104, %105 : vector<1x128xf32>
    %cst_62 = arith.constant 0.000000e+00 : f32
    %107 = vector.broadcast %cst_62 : f32 to vector<1x128xf32>
    %108 = arith.maximumf %106, %107 : vector<1x128xf32>
    %cst_63 = arith.constant 9.99999974E-6 : f32
    %109 = vector.broadcast %cst_63 : f32 to vector<1x128xf32>
    %110 = arith.addf %108, %109 : vector<1x128xf32>
    %111 = math.rsqrt %110 : vector<1x128xf32>
    %112 = arith.mulf %90, %111 : vector<1x128xf32>
    %113 = arith.mulf %100, %112 : vector<1x128xf32>
    %114 = arith.subf %91, %113 : vector<1x128xf32>
    %115 = vector.broadcast %112 : vector<1x128xf32> to vector<32x128xf32>
    %116 = arith.mulf %89, %115 : vector<32x128xf32>
    %117 = vector.broadcast %114 : vector<1x128xf32> to vector<32x128xf32>
    %118 = arith.addf %116, %117 : vector<32x128xf32>
    %cst_64 = arith.constant 0.000000e+00 : f32
    %119 = vector.broadcast %cst_64 : f32 to vector<32x128xf32>
    %120 = arith.cmpf ogt, %118, %119 : vector<32x128xf32>
    %cst_65 = arith.constant 3.000000e-01 : f32
    %121 = vector.broadcast %cst_65 : f32 to vector<32x128xf32>
    %122 = arith.mulf %121, %118 : vector<32x128xf32>
    %123 = arith.select %120, %118, %122 : vector<32x128xi1>, vector<32x128xf32>
    %124 = arith.truncf %123 : vector<32x128xf32> to vector<32x128xbf16>
    %c8_66 = arith.constant 8 : index
    %c0_67 = arith.constant 0 : index
    %125 = vector.load %arg15[%c8_66, %c0_67] : memref<48x128xbf16, #tpu.memory_space<vmem>>, vector<32x128xbf16>
    tpu.vector_store %arg15[%c8_66, %c0_67], %124 {strides = array<i32>} : memref<48x128xbf16, #tpu.memory_space<vmem>>, vector<32x128xbf16>,
    %c0_68 = arith.constant 0 : index
    %c0_69 = arith.constant 0 : index
    %126 = vector.load %arg5[%c0_68, %c0_69] : memref<1x128xf32, #tpu.memory_space<vmem>>, vector<1x128xf32>
    %c7_70 = arith.constant 7 : index
    %c0_71 = arith.constant 0 : index
    %127 = vector.load %arg15[%c7_70, %c0_71] : memref<48x128xbf16, #tpu.memory_space<vmem>>, vector<32x128xbf16>
    %c0_i32_72 = arith.constant 0 : i32
    %128 = arith.sitofp %c0_i32_72 : i32 to bf16
    %129 = vector.shape_cast %19 : vector<32x1xi1> to vector<32x1xi1>
    %130 = vector.broadcast %129 : vector<32x1xi1> to vector<32x128xi1>
    %131 = vector.broadcast %128 : bf16 to vector<32x128xbf16>
    %132 = arith.select %130, %127, %131 : vector<32x128xi1>, vector<32x128xbf16>
    %c9_73 = arith.constant 9 : index
    %c0_74 = arith.constant 0 : index
    %133 = vector.load %arg15[%c9_73, %c0_74] : memref<48x128xbf16, #tpu.memory_space<vmem>>, vector<32x128xbf16>
    %c0_i32_75 = arith.constant 0 : i32
    %134 = arith.sitofp %c0_i32_75 : i32 to bf16
    %135 = vector.shape_cast %21 : vector<32x1xi1> to vector<32x1xi1>
    %136 = vector.broadcast %135 : vector<32x1xi1> to vector<32x128xi1>
    %137 = vector.broadcast %134 : bf16 to vector<32x128xbf16>
    %138 = arith.select %136, %133, %137 : vector<32x128xi1>, vector<32x128xbf16>
    %c0_76 = arith.constant 0 : index
    %c0_77 = arith.constant 0 : index
    %c0_78 = arith.constant 0 : index
    %139 = vector.load %arg2[%c0_76, %c0_77, %c0_78] : memref<3x128x128xbf16, #tpu.memory_space<vmem>>, vector<1x128x128xbf16>
    %140 = vector.shape_cast %139 : vector<1x128x128xbf16> to vector<128x128xbf16>
    %cst_79 = arith.constant dense<0.000000e+00> : vector<32x128xf32>
    %141 = tpu.matmul %132, %140, %cst_79 {dimension_numbers = #tpu.dot_dimension_numbers<[1], [0], [0], [1], [0, 0, 1, 1], [], []>} : vector<32x128xbf16>, vector<128x128xbf16>, vector<32x128xf32> -> vector<32x128xf32>
    %c1_80 = arith.constant 1 : index
    %c0_81 = arith.constant 0 : index
    %c0_82 = arith.constant 0 : index
    %142 = vector.load %arg2[%c1_80, %c0_81, %c0_82] : memref<3x128x128xbf16, #tpu.memory_space<vmem>>, vector<1x128x128xbf16>
    %143 = vector.shape_cast %142 : vector<1x128x128xbf16> to vector<128x128xbf16>
    %cst_83 = arith.constant dense<0.000000e+00> : vector<32x128xf32>
    %144 = tpu.matmul %124, %143, %cst_83 {dimension_numbers = #tpu.dot_dimension_numbers<[1], [0], [0], [1], [0, 0, 1, 1], [], []>} : vector<32x128xbf16>, vector<128x128xbf16>, vector<32x128xf32> -> vector<32x128xf32>
    %145 = arith.addf %141, %144 : vector<32x128xf32>
    %c2_84 = arith.constant 2 : index
    %c0_85 = arith.constant 0 : index
    %c0_86 = arith.constant 0 : index
    %146 = vector.load %arg2[%c2_84, %c0_85, %c0_86] : memref<3x128x128xbf16, #tpu.memory_space<vmem>>, vector<1x128x128xbf16>
    %147 = vector.shape_cast %146 : vector<1x128x128xbf16> to vector<128x128xbf16>
    %cst_87 = arith.constant dense<0.000000e+00> : vector<32x128xf32>
    %148 = tpu.matmul %138, %147, %cst_87 {dimension_numbers = #tpu.dot_dimension_numbers<[1], [0], [0], [1], [0, 0, 1, 1], [], []>} : vector<32x128xbf16>, vector<128x128xbf16>, vector<32x128xf32> -> vector<32x128xf32>
    %149 = arith.addf %145, %148 : vector<32x128xf32>
    %150 = vector.broadcast %126 : vector<1x128xf32> to vector<32x128xf32>
    %151 = arith.addf %149, %150 : vector<32x128xf32>
    %c0_88 = arith.constant 0 : index
    %c0_89 = arith.constant 0 : index
    %152 = vector.load %arg3[%c0_88, %c0_89] : memref<64x128xf32, #tpu.memory_space<vmem>>, vector<64x128xf32>
    %cst_90 = arith.constant dense<0.000000e+00> : vector<32x128xf32>
    %153 = tpu.matmul %0, %152, %cst_90 {dimension_numbers = #tpu.dot_dimension_numbers<[1], [0], [0], [1], [0, 0, 1, 1], [], []>} : vector<32x64xf32>, vector<64x128xf32>, vector<32x128xf32> -> vector<32x128xf32>
    %c0_91 = arith.constant 0 : index
    %c0_92 = arith.constant 0 : index
    %154 = vector.load %arg6[%c0_91, %c0_92] : memref<1x128xf32, #tpu.memory_space<vmem>>, vector<1x128xf32>
    %155 = vector.broadcast %154 : vector<1x128xf32> to vector<32x128xf32>
    %156 = arith.addf %153, %155 : vector<32x128xf32>
    %157 = arith.addf %151, %156 : vector<32x128xf32>
    %c0_93 = arith.constant 0 : index
    %c0_94 = arith.constant 0 : index
    %158 = vector.load %arg16[%c0_93, %c0_94] : memref<32x128xf32, #tpu.memory_space<vmem>>, vector<32x128xf32>
    tpu.vector_store %arg16[%c0_93, %c0_94], %157 {strides = array<i32>} : memref<32x128xf32, #tpu.memory_space<vmem>>, vector<32x128xf32>,
    %c0_95 = arith.constant 0 : index
    %c0_96 = arith.constant 0 : index
    %159 = tpu.strided_load %arg16[%c0_95, %c0_96] {strides = array<i32: 2, 1>} : memref<32x128xf32, #tpu.memory_space<vmem>>, vector<16x128xf32>
    %c1_97 = arith.constant 1 : index
    %c0_98 = arith.constant 0 : index
    %160 = tpu.strided_load %arg16[%c1_97, %c0_98] {strides = array<i32: 2, 1>} : memref<32x128xf32, #tpu.memory_space<vmem>>, vector<16x128xf32>
    %161 = arith.maximumf %159, %160 : vector<16x128xf32>
    %162 = vector.extract_strided_slice %161 {offsets = [0, 0], sizes = [16, 64], strides = [1, 1]} : vector<16x128xf32> to vector<16x64xf32>
    %163 = vector.extract_strided_slice %161 {offsets = [0, 64], sizes = [16, 64], strides = [1, 1]} : vector<16x128xf32> to vector<16x64xf32>
    %164 = arith.maximumf %162, %163 : vector<16x64xf32>
    %c0_99 = arith.constant 0 : index
    %c0_100 = arith.constant 0 : index
    %165 = vector.load %arg13[%c0_99, %c0_100] : memref<16x64xf32, #tpu.memory_space<vmem>>, vector<16x64xf32>
    tpu.vector_store %arg13[%c0_99, %c0_100], %164 {strides = array<i32>} : memref<16x64xf32, #tpu.memory_space<vmem>>, vector<16x64xf32>,
    return
  }
}

</mosaic_0001>

<bundles_post_ra>
// kernel: tpu_custom_call.1
= control target key start
LH: loop header
LB: loop body
LE: loop exit
PB: predicated region body
PF: predicated region fallthrough
CT: control target
= control target key end

     0   :  { %18 = vsyncpa [#allocation6], 0  ;;  %s2878_s0 = inlined_call_operand.hbm [shape: f32[32,64], index: 0, kind: input, shape index: {}]   ;;  %s2879_s1 = inlined_call_operand.hbm [shape: bf16[3,64,128], index: 1, kind: input, shape index: {}]   ;;  %s2880_s2 = inlined_call_operand.hbm [shape: bf16[3,128,128], index: 2, kind: input, shape index: {}]   ;;  %s2881_s3 = inlined_call_operand.hbm [shape: f32[64,128], index: 3, kind: input, shape index: {}]   ;;  %s2882_s4 = inlined_call_operand.vmem [shape: f32[1,128], index: 4, kind: input, shape index: {}]   ;;  %s2883_s5 = inlined_call_operand.vmem [shape: f32[1,128], index: 5, kind: input, shape index: {}]   ;;  %s2884_s6 = inlined_call_operand.vmem [shape: f32[1,128], index: 6, kind: input, shape index: {}]   ;;  %s2885_s7 = inlined_call_operand.vmem [shape: f32[1,64], index: 7, kind: input, shape index: {}]   ;;  %s2886_s8 = inlined_call_operand.vmem [shape: f32[1,64], index: 8, kind: input, shape index: {}]   ;;  %s2887_s9 = inlined_call_operand.vmem [shape: f32[1,128], index: 9, kind: input, shape index: {}]   ;;  %s2888_s10 = inlined_call_operand.vmem [shape: f32[1,128], index: 10, kind: input, shape index: {}]   ;;  %s2889_s11 = inlined_call_operand.hbm [shape: f32[64,64], index: 11, kind: input, shape index: {}]   ;;  %s2890_s12 = inlined_call_operand.hbm [shape: f32[128,128], index: 12, kind: input, shape index: {}]   ;;  %s2891_s13 = inlined_call_operand.hbm [shape: f32[16,64], index: 13, kind: output, shape index: {}]  }
   0x1   :  { %19 = vsyncpa [#allocation9], 0 }
   0x2   :  { %20 = vsyncpa [#allocation12], 0 }
   0x3   :  { %21 = vsyncpa [#allocation15], 0 }
   0x4   :  { %22 = vsyncpa [#allocation7], 0  ;;  %s2426_s25 = smov [#allocation8]  }
   0x5   :  { %s40_s26 = sshll.u32 %s2426_s25, 4  ;;  %s41_s26 = int_to_ptr.vmem [resolvable:$true] %s40_s26 }
   0x6   :  { %s2284_s27 = scalar_lea.vmem %s41_s26, 1536  ;;  %p2289_p1 = scmp.lt.s32.totalorder %s41_s26, %s41_s26 }
   0x7   :  { %p2285_p0 = scmp.ne.s32.totalorder %s41_s26, %s2284_s27  ;;  %p2290_p2 = scmp.lt.s32.totalorder %s2284_s27, %s2284_s27 }
   0x9   :  { %p2291_p3 = por %p2290_p2, %p2289_p1 }
   0xb   :  { %p2292_p4 = pnand %p2291_p3, %p2285_p0 }
   0xd   :  { %2295 = shalt.err (!%p2292_p4)
}
   0xe   :  { %s2427_s28 = smov 64   ;;  %s2428_s29 = smov 4  }
   0xf   :  { %46 = dma.hbm_to_vmem [thread:$0]  %s2879_s1, 1536, %s41_s26, [#allocation9], %s2427_s28, %s2427_s28, %s2428_s29  }
  0x10   :  { %s2429_s15 = smov [#allocation11]   ;;  %s2430_s17 = smov [#allocation5]  }
  0x11   :  { %s64_s16 = sshll.u32 %s2429_s15, 4  ;;  %s28_s18 = sshll.u32 %s2430_s17, 4  ;;  %s65_s16 = int_to_ptr.vmem [resolvable:$true] %s64_s16  ;;  %s29_s18 = int_to_ptr.vmem [resolvable:$true] %s28_s18 }
  0x12   :  { %s2304_s19 = scalar_lea.vmem %s65_s16, 1024  ;;  %p2309_p6 = scmp.lt.s32.totalorder %s65_s16, %s65_s16 }
  0x13   :  { %p2305_p5 = scmp.ne.s32.totalorder %s65_s16, %s2304_s19  ;;  %p2310_p7 = scmp.lt.s32.totalorder %s2304_s19, %s2304_s19 }
  0x15   :  { %p2311_p8 = por %p2310_p7, %p2309_p6 }
  0x17   :  { %p2312_p9 = pnand %p2311_p8, %p2305_p5 }
  0x19   :  { %2315 = shalt.err (!%p2312_p9)
}
  0x1a   :  { %s2431_s20 = smov 128   ;;  %s2432_s21 = smov 8  }
  0x1b   :  { %70 = dma.hbm_to_vmem [thread:$0]  %s2881_s3, 1024, %s65_s16, [#allocation12], %s2431_s20, %s2431_s20, %s2432_s21  }
  0x1c   :  { %s2324_s1 = scalar_lea.vmem %s29_s18, 512  ;;  %p2329_p11 = scmp.lt.s32.totalorder %s29_s18, %s29_s18 }
  0x1d   :  { %p2325_p10 = scmp.ne.s32.totalorder %s29_s18, %s2324_s1  ;;  %p2330_p12 = scmp.lt.s32.totalorder %s2324_s1, %s2324_s1 }
  0x1f   :  { %p2331_p13 = por %p2330_p12, %p2329_p11 }
  0x21   :  { %p2332_p0 = pnand %p2331_p13, %p2325_p10 }
  0x23   :  { %2335 = shalt.err (!%p2332_p0)
}
  0x24   :  { %34 = dma.hbm_to_vmem [thread:$0]  %s2878_s0, 512, %s29_s18, [#allocation6], %s2431_s20, %s2431_s20, %s2432_s21  }
  0x25   :  { %s2433_s26 = smov [#allocation10]   ;;  %s2434_s30 = smov [#allocation13]  }
  0x26   :  { %s52_s27 = sshll.u32 %s2433_s26, 4  ;;  %s90_s3 = sshll.u32 %s2434_s30, 4  ;;  %s53_s27 = int_to_ptr.vmem [resolvable:$true] %s52_s27  ;;  %s91_s3 = int_to_ptr.vmem [resolvable:$true] %s90_s3 }
  0x27   :  { %s2344_s14 = scalar_lea.vmem %s53_s27, 3072  ;;  %p2349_p2 = scmp.lt.s32.totalorder %s53_s27, %s53_s27 }
  0x28   :  { %p2345_p1 = scmp.ne.s32.totalorder %s53_s27, %s2344_s14  ;;  %p2350_p3 = scmp.lt.s32.totalorder %s2344_s14, %s2344_s14 }
  0x2a   :  { %p2351_p4 = por %p2350_p3, %p2349_p2 }
  0x2c   :  { %p2352_p5 = pnand %p2351_p4, %p2345_p1 }
  0x2e   :  { %2355 = shalt.err (!%p2352_p5)
}
  0x2f   :  { %58 = dma.hbm_to_vmem [thread:$0]  %s2880_s2, 3072, %s53_s27, [#allocation9], %s2427_s28, %s2427_s28, %s2428_s29  }
  0x30   :  { %s2364_s0 = scalar_lea.vmem %s91_s3, 1024  ;;  %p2369_p7 = scmp.lt.s32.totalorder %s91_s3, %s91_s3 }
  0x31   :  { %p2365_p6 = scmp.ne.s32.totalorder %s91_s3, %s2364_s0  ;;  %p2370_p8 = scmp.lt.s32.totalorder %s2364_s0, %s2364_s0 }
  0x33   :  { %p2371_p9 = por %p2370_p8, %p2369_p7 }
  0x35   :  { %p2372_p10 = pnand %p2371_p9, %p2365_p6 }
  0x37   :  { %2375 = shalt.err (!%p2372_p10)
}
  0x38   :  { %96 = dma.hbm_to_vmem [thread:$0]  %s2889_s11, 1024, %s91_s3, [#allocation12], %s2431_s20, %s2431_s20, %s2432_s21  }
  0x39   :  { %s2435_s19 = smov [#allocation14]  }
  0x3a   :  { %s102_s22 = sshll.u32 %s2435_s19, 4  ;;  %s103_s22 = int_to_ptr.vmem [resolvable:$true] %s102_s22 }
  0x3b   :  { %s2384_s23 = scalar_lea.vmem %s103_s22, 2048  ;;  %p2389_p12 = scmp.lt.s32.totalorder %s103_s22, %s103_s22 }
  0x3c   :  { %p2385_p11 = scmp.ne.s32.totalorder %s103_s22, %s2384_s23  ;;  %p2390_p13 = scmp.lt.s32.totalorder %s2384_s23, %s2384_s23 }
  0x3e   :  { %p2391_p0 = por %p2390_p13, %p2389_p12 }
  0x40   :  { %p2392_p1 = pnand %p2391_p0, %p2385_p11 }
  0x42   :  { %2395 = shalt.err (!%p2392_p1)
}
  0x43   :  { %108 = dma.hbm_to_vmem [thread:$0]  %s2890_s12, 2048, %s103_s22, [#allocation15], %s2431_s20, %s2431_s20, %s2432_s21  }
  0x44   :  { %2416 = dma.done.wait [#allocation6], 512  }
  0x45   :  { %2417 = vsyncadd [#allocation6], 4294966784 }
  0x46   :  { %2418 = dma.done.wait [#allocation9], 4608  }
  0x47   :  { %2419 = vsyncadd [#allocation9], 4294962688 }
  0x48   :  { %2420 = dma.done.wait [#allocation12], 2048  }
  0x49   :  { %2421 = vsyncadd [#allocation12], 4294965248 }
  0x4a   :  { %2422 = dma.done.wait [#allocation15], 2048  }
  0x4b   :  { %2423 = vsyncadd [#allocation15], 4294965248  ;;  %v2436_v0 = vmov 0.0   ;;  %vm2437_vm0 = vmmov 0   ;;  %v240_v1 = vld [vmem:[#allocation13 + $0x38] sm:$0xff]  ;;  %v239_v2 = vld [vmem:[#allocation13 + $0x30] sm:$0xff]  ;;  %v134_v53 = vlaneseq }
  0x4c   :  { %1991 = vmatprep.subr.mxu0 %v2436_v0  ;;  %2010 = vmatprep.subr.mxu1 %v2436_v0  ;;  %vm2892_vm1 = vcmask 523264   ;;  %v238_v3 = vld [vmem:[#allocation13 + $0x28] sm:$0xff]  ;;  %v2555_v4 = vld [vmem:[#allocation5] sm:$0xff]  ;;  %v2559_v6 = vld [vmem:[#allocation5 + $0x10] sm:$0xff]  ;;  %vm195_vm2 = vcmask 519168   ;;  %v2438_v46 = vmov 0  }
  0x4d   :  { %2007 = vmatprep.mubr.msk.f32.mxu0 %vm2437_vm0, %v2436_v0  ;;  %2026 = vmatprep.mubr.msk.f32.mxu1 %vm2437_vm0, %v2436_v0  ;;  %v2557_v5 = vld [vmem:[#allocation5 + $0x8] sm:$0xff]  ;;  %v2561_v7 = vld [vmem:[#allocation5 + $0x18] sm:$0xff]  ;;  %v203_v8 = vsel %vm2892_vm1, %v2555_v4, 0.0  ;;  %v216_v9 = vmul.f32 %v2555_v4, %v2555_v4  ;;  %v237_v10 = vld [vmem:[#allocation13 + $0x20] sm:$0xff]  ;;  %v206_v12 = vsel %vm2892_vm1, %v2559_v6, 0.0  ;;  %v218_v16 = vmul.f32 %v2559_v6, %v2559_v6 }
  0x4e   :  { %1992 = vmatpush3.msra.mxu0 %v240_v1  ;;  %2011 = vmatpush3.msra.mxu1 %v240_v1  ;;  %v204_v11 = vsel %vm2892_vm1, %v2557_v5, 0.0  ;;  %v217_v13 = vmul.f32 %v2557_v5, %v2557_v5  ;;  %v236_v14 = vld [vmem:[#allocation13 + $0x18] sm:$0xff]  ;;  %v219_v17 = vmul.f32 %v2561_v7, %v2561_v7  ;;  %v235_v19 = vld [vmem:[#allocation13 + $0x10] sm:$0xff]  ;;  %v208_v20 = vsel %vm2892_vm1, %v2561_v7, 0.0  ;;  %v234_v26 = vld [vmem:[#allocation13 + $0x8] sm:$0xff] }
  0x4f   :  { %1993 = vmatprep.subr.mxu0 %v2436_v0  ;;  %2012 = vmatprep.subr.mxu1 %v2436_v0  ;;  %v205_v15 = vadd.f32 %v204_v11, %v203_v8  ;;  %v220_v18 = vsel %vm2892_vm1, %v216_v9, 0.0  ;;  %v223_v24 = vsel %vm2892_vm1, %v218_v16, 0.0  ;;  %v233_v29 = vld [vmem:[#allocation13] sm:$0xff]  ;;  %v2232_v43 = vld [vmem:[#allocation8 + $0x38] sm:$0xff]   ;;  %v2233_v44 = vld [vmem:[#allocation8 + $0x30] sm:$0xff]   ;;  %v135_v59 = vshrl.u32 %v134_v53, 7 }
  0x50   :  { %1994 = vmatpush3.msra.mxu0 %v239_v2  ;;  %2013 = vmatpush3.msra.mxu1 %v239_v2  ;;  %v221_v21 = vsel %vm2892_vm1, %v217_v13, 0.0  ;;  %v225_v25 = vsel %vm2892_vm1, %v219_v17, 0.0  ;;  %v2234_v45 = vld [vmem:[#allocation8 + $0x28] sm:$0xff]   ;;  %196 = vst.msk [vmem:[#allocation2] sm:$0xf] %vm195_vm2, %v2438_v46  ;;  %v2235_v47 = vld [vmem:[#allocation8 + $0x20] sm:$0xff]  }
  0x51   :  { %1995 = vmatprep.subr.mxu0 %v2436_v0  ;;  %2014 = vmatprep.subr.mxu1 %v2436_v0  ;;  %v207_v22 = vadd.f32 %v206_v12, %v205_v15  ;;  %v222_v23 = vadd.f32 %v221_v21, %v220_v18  ;;  %197 = vst.msk [vmem:[#allocation2 + $0x14] sm:$0xf] %vm195_vm2, %v2438_v46  ;;  %198 = vst [vmem:[#allocation3] sm:$0xf] %v2438_v46  ;;  %v2236_v48 = vld [vmem:[#allocation8 + $0x18] sm:$0xff]   ;;  %v2238_v50 = vld [vmem:[#allocation8 + $0x10] sm:$0xff]  }
  0x52   :  { %1996 = vmatpush3.msra.mxu0 %v238_v3  ;;  %2015 = vmatpush3.msra.mxu1 %v238_v3  ;;  %199 = vst [vmem:[#allocation3 + $0x14] sm:$0xf] %v2438_v46  ;;  %v2603_v49 = vld [vmem:[#allocation8 + $0x58] sm:$0xff]   ;;  %v2240_v51 = vld [vmem:[#allocation8 + $0x8] sm:$0xff]   ;;  %v2242_v52 = vld [vmem:[#allocation8] sm:$0xff]   ;;  %v137_v63 = vadd.s32 16, %v135_v59 }
  0x53   :  { %1997 = vmatprep.subr.mxu0 %v2436_v0  ;;  %2016 = vmatprep.subr.mxu1 %v2436_v0  ;;  %v209_v27 = vadd.f32 %v208_v20, %v207_v22  ;;  %v224_v28 = vadd.f32 %v223_v24, %v222_v23  ;;  %v143_v1 = vand.u32 15, %v135_v59  ;;  %v138_v9 = vadd.s32 24, %v135_v59  ;;  %v200_v22 = vld [vmem:[%s2885_s7] sm:$0x1] }
  0x54   :  { %1998 = vmatpush3.msra.mxu0 %v237_v10  ;;  %2017 = vmatpush3.msra.mxu1 %v237_v10  ;;  %v157_v8 = vand.u32 15, %v137_v63  ;;  %v136_v10 = vadd.s32 8, %v135_v59  ;;  %vm2439_vm6 = vmmov 1   ;;  %vm471_vm13 = vsmask.f32 3328 }
  0x55   :  { %1999 = vmatprep.subr.mxu0 %v2436_v0  ;;  %2018 = vmatprep.subr.mxu1 %v2436_v0  ;;  %v210_v30 = vrot.slane %v209_v27, 4  ;;  %v226_v31 = vadd.f32 %v225_v25, %v224_v28  ;;  %vm187_vm3 = vcmp.ge.s32.totalorder %v143_v1, 1  ;;  %v164_v11 = vand.u32 15, %v138_v9  ;;  %vm464_vm7 = vmpackc.low %vm2439_vm6, %vm2439_vm6 }
  0x56   :  { %2000 = vmatpush3.msra.mxu0 %v236_v14  ;;  %2019 = vmatpush3.msra.mxu1 %v236_v14  ;;  %vm463_vm4 = vmpackc.low %vm187_vm3, %vm187_vm3  ;;  %vm189_vm5 = vcmp.ge.s32.totalorder %v157_v8, 1  ;;  %v150_v13 = vand.u32 15, %v136_v10  ;;  %v468_v14 = vsel %vm464_vm7, 65537, %v2438_v46  ;;  %vm472_vm14 = vsmask.f32 7440  ;;  %v2267_v10 = vld [vmem:[#allocation10 + $0x80] sm:$0xff]  }
  0x57   :  { %2001 = vmatprep.subr.mxu0 %v2436_v0  ;;  %2020 = vmatprep.subr.mxu1 %v2436_v0  ;;  %v211_v32 = vadd.f32 %v210_v30, %v209_v27  ;;  %v227_v33 = vrot.slane %v226_v31, 4  ;;  %v467_v12 = vsel %vm463_vm4, 65537, %v2438_v46  ;;  %vm465_vm8 = vmpackc.low %vm189_vm5, %vm189_vm5  ;;  %vm2609_vm9 = vcmp.le.s32.totalorder %v164_v11, 14 }
  0x58   :  { %2002 = vmatpush3.msra.mxu0 %v235_v19  ;;  %2021 = vmatpush3.msra.mxu1 %v235_v19  ;;  %v475_v16 = vshll.u32 %v467_v12, 16  ;;  %v478_v17 = vshrl.u32 %v467_v12, 16  ;;  %v469_v18 = vsel %vm465_vm8, 65537, %v2438_v46  ;;  %vm2614_vm10 = vcmp.le.s32.totalorder %v150_v13, 14  ;;  %vm535_vm11 = vmpackc.low %vm2609_vm9, %vm2609_vm9  ;;  %v523_v9 = vld [vmem:[#allocation2 + $0x14] sm:$0x1] }
  0x59   :  { %2003 = vmatprep.subr.mxu0 %v2436_v0  ;;  %2022 = vmatprep.subr.mxu1 %v2436_v0  ;;  %v212_v34 = vrot.slane %v211_v32, 2  ;;  %v228_v35 = vadd.f32 %v227_v33, %v226_v31  ;;  %v484_v20 = vshll.u32 %v468_v14, 16  ;;  %v488_v21 = vshrl.u32 %v468_v14, 16  ;;  %vm533_vm12 = vmpackc.low %vm2614_vm10, %vm2614_vm10 }
  0x5a   :  { %2004 = vmatpush3.msra.mxu0 %v234_v26  ;;  %2023 = vmatpush3.msra.mxu1 %v234_v26  ;;  %v2624_v23 = vrot.slane %v475_v16, 5  ;;  %v480_v24 = vrot.slane %v478_v17, 4  ;;  %v494_v25 = vshll.u32 %v469_v18, 16  ;;  %v498_v26 = vshrl.u32 %v469_v18, 16  ;;  %vm2669_vm9 = vmor %vm471_vm13, %vm472_vm14 }
  0x5b   :  { %2005 = vmatprep.subr.mxu0 %v2436_v0  ;;  %2024 = vmatprep.subr.mxu1 %v2436_v0  ;;  %v213_v36 = vadd.f32 %v212_v34, %v211_v32  ;;  %v229_v37 = vrot.slane %v228_v35, 2  ;;  %v2629_v27 = vsub.s32 0, %v135_v59  ;;  %v2632_v28 = vsel %vm535_vm11, 65537, %v2438_v46  ;;  %v201_v34 = vld [vmem:[%s2886_s8] sm:$0x1] }
  0x5c   :  { %2006 = vmatpush3.msra.mxu0 %v233_v29  ;;  %2025 = vmatpush3.msra.mxu1 %v233_v29  ;;  %v2634_v30 = vrot.slane %v484_v20, 5  ;;  %v490_v31 = vrot.slane %v488_v21, 4  ;;  %v537_v33 = vsel %vm533_vm12, 65537, %v2438_v46  ;;  %vm540_vm15 = vsmask.f32 256 }
  0x5d   :  { %v214_v38 = vrot.slane %v213_v36, 1  ;;  %v230_v39 = vadd.f32 %v229_v37, %v228_v35  ;;  %2029 = vmatprep.subr.bf16.mxu0 %v2232_v43  ;;  %2041 = vmatprep.subr.bf16.mxu1 %v2236_v48  ;;  %v481_v35 = vor.u32 %v480_v24, %v2624_v23  ;;  %v500_v37 = vrot.slane %v498_v26, 4  ;;  %v2239_v24 = vld [vmem:[#allocation8 + $0x50] sm:$0xff]  }
  0x5e   :  { %vm541_vm3 = vsmask.f32 4368 }
  0x5f   :  { %v215_v40 = vadd.f32 %v214_v38, %v213_v36  ;;  %v231_v41 = vrot.slane %v230_v39, 1  ;;  %v2641_v36 = vrot.slane %v494_v25, 5  ;;  %v570_v38 = vshrl.u32 %v2632_v28, 16  ;;  %vm2675_vm10 = vmor %vm540_vm15, %vm541_vm3 }
  0x61   :  { %2008 = vmatmul.mubr.msk.f32.vlgmr.msra.gmra.mxu0 %vm2892_vm1, %v215_v40  ;;  %v232_v42 = vadd.f32 %v231_v41, %v230_v39  ;;  %v491_v41 = vor.u32 %v490_v31, %v2634_v30 }
  0x62   :  { %2030 = vmatpush3.bf16.msra.mxu0 %v2232_v43  ;;  %v552_v43 = vshrl.u32 %v537_v33, 16 }
  0x63   :  { %2027 = vmatmul.mubr.msk.f32.vlgmr.msra.gmra.mxu1 %vm2892_vm1, %v232_v42  ;;  %2031 = vmatprep.subr.bf16.mxu0 %v2233_v44  ;;  %v2646_v42 = vrot.slane %v488_v21, 7 }
  0x64   :  { %2042 = vmatpush3.bf16.msra.mxu1 %v2236_v48  ;;  %v501_v48 = vor.u32 %v500_v37, %v2641_v36 }
  0x65   :  { %2043 = vmatprep.subr.bf16.mxu1 %v2238_v50 }
  0x66   :  { %2032 = vmatpush3.bf16.msra.mxu0 %v2233_v44  ;;  %v502_v18 = vrot.slane %v501_v48, 4 }
  0x67   :  { %2033 = vmatprep.subr.bf16.mxu0 %v2234_v45 }
  0x68   :  { %2044 = vmatpush3.bf16.msra.mxu1 %v2238_v50  ;;  %v572_v50 = vrot.slane %v570_v38, 7  ;;  %v2243_v38 = vld [vmem:[#allocation8 + $0x40] sm:$0xff]  }
  0x69   :  { %2045 = vmatprep.subr.bf16.mxu1 %v2240_v51 }
  0x6a   :  { %2034 = vmatpush3.bf16.msra.mxu0 %v2234_v45  ;;  %v555_v45 = vshll.u32 %v537_v33, 16  ;;  %v507_v33 = vsel %vm2669_vm9, %v502_v18, %v2634_v30 }
  0x6b   :  { %2035 = vmatprep.subr.bf16.mxu0 %v2235_v47  ;;  %vm2723_vm15 = vcmp.ne.s16.totalorder %v507_v33, 0  ;;  %v977_v33 = vld [vmem:[#allocation14 + $0x70] sm:$0xff] }
  0x6c   :  { %2046 = vmatpush3.bf16.msra.mxu1 %v2240_v51 }
  0x6d   :  { %2047 = vmatprep.subr.bf16.mxu1 %v2242_v52 }
  0x6e   :  { %2036 = vmatpush3.bf16.msra.mxu0 %v2235_v47  ;;  %v2649_v47 = vrot.slane %v481_v35, 4 }
  0x6f   :  { %2053 = vmatprep.subr.bf16.mxu0 %v2603_v49 }
  0x70   :  { %2048 = vmatpush3.bf16.msra.mxu1 %v2242_v52 }
  0x71   :  { %2065 = vmatprep.subr.mxu1 %v2436_v0 }
 0x121   :  { %v310_v54 = vpop.f32.mrf.mxu0 }
 0x122   :  { %v314_v55 = vmul.f32 0.001953125, %v310_v54 }
 0x123   :  { %v2009_v56 = vpop.f32.mrf.mxu0  ;;  %v384_v57 = vpop.f32.mrf.mxu1 }
 0x124   :  { %v389_v58 = vmul.f32 %v314_v55, %v314_v55  ;;  %v388_v60 = vmul.f32 0.001953125, %v384_v57  ;;  %v554_v56 = vrot.slane %v552_v43, 7  ;;  %v577_v57 = vrot.slane %v572_v50, 4 }
 0x125   :  { %v2028_v61 = vpop.f32.mrf.mxu1 }
 0x126   :  { %v390_v62 = vsub.f32 %v388_v60, %v389_v58  ;;  %v2659_v61 = vor.u32 %v2646_v42, %v484_v20  ;;  %v557_v8 = vor.u32 %v555_v45, %v554_v56  ;;  %vm2663_vm8 = vcmp.ne.s16.totalorder %v577_v57, 0 }
 0x127   :  { %v559_v20 = vrot.slane %v554_v56, 4  ;;  %v587_v26 = vsel %vm2663_vm8, %v523_v9, 0 }
 0x128   :  { %v391_v2 = vmax.f32 %v390_v62, 0.0  ;;  %v573_v62 = vshll.u32 %v2632_v28, 16  ;;  %v487_v28 = vsel %vm2669_vm9, %v2649_v47, %v2634_v30  ;;  %v1817_v35 = vcombine.low %v587_v26, %v587_v26 }
 0x129   :  { %vm2713_vm11 = vcmp.ne.s16.totalorder %v487_v28, 0  ;;  %vm578_vm13 = vcmp.ne.s16.totalorder %v2659_v61, 0 }
 0x12a   :  { %v392_v3 = vadd.f32 1e-05, %v391_v2  ;;  %v575_v25 = vor.u32 %v573_v62, %v572_v50  ;;  %v842_v43 = vshll.u32 %v1817_v35, 16  ;;  %v976_v35 = vld [vmem:[#allocation14 + $0x68] sm:$0xff] }
 0x12c   :  { %2268 = vrsqrt.f32 %v392_v3 }
 0x139   :  { %v2269_v29 = vpop.eup %2268 }
 0x13a   :  { %v394_v32 = vmul.f32 %v2269_v29, %v200_v22 }
 0x13c   :  { %v395_v39 = vmul.f32 %v394_v32, %v314_v55  ;;  %v401_v40 = vrot.slane %v394_v32, %v2629_v27  ;;  %v2656_v55 = vrot.slane %v491_v41, 4  ;;  %v450_v32 = vld [vmem:[#allocation2] sm:$0x8] }
 0x13e   :  { %v396_v44 = vsub.f32 %v201_v34, %v395_v39  ;;  %v403_v46 = vmul.f32 %v401_v40, %v2555_v4  ;;  %v404_v51 = vmul.f32 %v401_v40, %v2557_v5  ;;  %v405_v53 = vmul.f32 %v401_v40, %v2559_v6 }
 0x13f   :  { %v406_v54 = vmul.f32 %v401_v40, %v2561_v7  ;;  %v550_v5 = vrot.slane %v2646_v42, 4  ;;  %v497_v29 = vsel %vm2669_vm9, %v2656_v55, %v2641_v36  ;;  %v2707_v34 = vsel %vm2675_vm10, %v559_v20, %v2659_v61  ;;  %v2241_v36 = vld [vmem:[#allocation8 + $0x48] sm:$0xff]  }
 0x140   :  { %v411_v52 = vrot.slane %v396_v44, %v2629_v27  ;;  %vm2717_vm12 = vcmp.ne.s16.totalorder %v497_v29, 0  ;;  %vm517_vm3 = vcmp.ne.s16.totalorder %v2656_v55, 0 }
 0x141   :  { %v2697_v31 = vsel %vm2675_vm10, %v550_v5, %v557_v8  ;;  %v2711_v37 = vsel %vm2675_vm10, %v550_v5, %v575_v25 }
 0x142   :  { %v413_v58 = vadd.f32 %v411_v52, %v403_v46  ;;  %v414_v4 = vadd.f32 %v411_v52, %v404_v51  ;;  %v415_v59 = vadd.f32 %v411_v52, %v405_v53  ;;  %v416_v60 = vadd.f32 %v411_v52, %v406_v54 }
 0x143   :  { %vm579_vm14 = vcmp.ne.s16.totalorder %v2697_v31, 0 }
 0x144   :  { %vm417_vm4 = vcmp.gt.f32.partialorder %v413_v58, 0.0  ;;  %vm418_vm5 = vcmp.gt.f32.partialorder %v414_v4, 0.0  ;;  %v421_v6 = vmul.f32 0.3, %v413_v58  ;;  %v422_v7 = vmul.f32 0.3, %v414_v4 }
 0x145   :  { %vm419_vm6 = vcmp.gt.f32.partialorder %v415_v59, 0.0  ;;  %vm420_vm7 = vcmp.gt.f32.partialorder %v416_v60, 0.0  ;;  %v423_v63 = vmul.f32 0.3, %v415_v59  ;;  %v424_v1 = vmul.f32 0.3, %v416_v60 }
 0x146   :  { %v425_v2 = vsel %vm417_vm4, %v413_v58, %v421_v6  ;;  %v426_v3 = vsel %vm418_vm5, %v414_v4, %v422_v7  ;;  %vm580_vm4 = vcmp.ne.s16.totalorder %v2707_v34, 0  ;;  %vm697_vm5 = vsmask.f32 4352 }
 0x147   :  { %v429_v11 = vpack.c.bf16 %v426_v3, %v425_v2  ;;  %v1865_v12 = vpack.c.bf16 %v425_v2, %v425_v2  ;;  %v1866_v13 = vpack.c.bf16 %v426_v3, %v426_v3  ;;  %v427_v14 = vsel %vm419_vm6, %v415_v59, %v423_v63 }
 0x148   :  { %v428_v16 = vsel %vm420_vm7, %v416_v60, %v424_v1  ;;  %v1867_v17 = vpack.c.bf16 %v427_v14, %v427_v14  ;;  %vm581_vm6 = vcmp.ne.s16.totalorder %v2711_v37, 0  ;;  %vm825_vm7 = vsmask.f32 7424 }
 0x149   :  { %445 = vst.msk [vmem:[#allocation2 + $0x4] sm:$0xf] %vm195_vm2, %v1865_v12  ;;  %446 = vst.msk [vmem:[#allocation2 + $0x8] sm:$0xf] %vm195_vm2, %v1866_v13  ;;  %2037 = vmatprep.mubr.msk.bf16.mxu0 %vm2892_vm1, %v429_v11  ;;  %v430_v21 = vpack.c.bf16 %v428_v16, %v427_v14  ;;  %v1868_v22 = vpack.c.bf16 %v428_v16, %v428_v16  ;;  %v844_v63 = vrot.slane %v842_v43, 1  ;;  %v970_v43 = vld [vmem:[#allocation14 + $0x38] sm:$0xff] }
 0x14a   :  { %447 = vst.msk [vmem:[#allocation2 + $0xc] sm:$0xf] %vm195_vm2, %v1867_v17 }
 0x14b   :  { %448 = vst.msk [vmem:[#allocation2 + $0x10] sm:$0xf] %vm195_vm2, %v1868_v22  ;;  %2038 = vmatmul.mubr.msk.bf16.vlgmr.msra.gmra.mxu0 %vm2892_vm1, %v430_v21  ;;  %vm513_vm2 = vcmp.ne.s16.totalorder %v2624_v23, 0 }
 0x14c   :  { %2054 = vmatpush3.bf16.msra.mxu0 %v2603_v49  ;;  %v518_v40 = vsel %vm513_vm2, %v450_v32, 0  ;;  %v978_v32 = vld [vmem:[#allocation14 + $0x78] sm:$0xff] }
 0x14d   :  { %2055 = vmatprep.subr.bf16.mxu0 %v2239_v24 }
 0x150   :  { %2056 = vmatpush3.bf16.msra.mxu0 %v2239_v24  ;;  %v451_v41 = vld [vmem:[#allocation2 + $0x4] sm:$0xf]  ;;  %v452_v42 = vld [vmem:[#allocation2 + $0x8] sm:$0xf] }
 0x151   :  { %2057 = vmatprep.subr.bf16.mxu0 %v2241_v36  ;;  %v453_v44 = vld [vmem:[#allocation2 + $0xc] sm:$0xf]  ;;  %v519_v45 = vsel %vm2713_vm11, %v451_v41, 0  ;;  %v520_v46 = vsel %vm2717_vm12, %v452_v42, 0  ;;  %v583_v47 = vsel %vm578_vm13, %v451_v41, 0  ;;  %v584_v48 = vsel %vm579_vm14, %v452_v42, 0 }
 0x152   :  { %v521_v50 = vsel %vm2723_vm15, %v453_v44, 0  ;;  %v1806_v51 = vcombine.low %v518_v40, %v519_v45  ;;  %v454_v52 = vld [vmem:[#allocation2 + $0x10] sm:$0xf]  ;;  %v585_v53 = vsel %vm580_vm4, %v453_v44, 0  ;;  %v1815_v54 = vcombine.low %v583_v47, %v584_v48  ;;  %v973_v40 = vld [vmem:[#allocation14 + $0x50] sm:$0xff]  ;;  %v972_v41 = vld [vmem:[#allocation14 + $0x48] sm:$0xff] }
 0x153   :  { %v1807_v56 = vcombine.low %v520_v46, %v521_v50  ;;  %v522_v57 = vsel %vm517_vm3, %v454_v52, 0  ;;  %v586_v58 = vsel %vm581_vm6, %v454_v52, 0  ;;  %v971_v42 = vld [vmem:[#allocation14 + $0x40] sm:$0xff]  ;;  %v969_v44 = vld [vmem:[#allocation14 + $0x30] sm:$0xff]  ;;  %v968_v45 = vld [vmem:[#allocation14 + $0x28] sm:$0xff] }
 0x154   :  { %2058 = vmatpush3.bf16.msra.mxu0 %v2241_v36  ;;  %v699_v4 = vshrl.u32 %v1806_v51, 16  ;;  %v702_v59 = vshll.u32 %v1806_v51, 16  ;;  %v1808_v60 = vcombine.low %v522_v57, %v522_v57  ;;  %v1816_v5 = vcombine.low %v585_v53, %v586_v58  ;;  %v975_v36 = vld [vmem:[#allocation14 + $0x60] sm:$0xff]  ;;  %v966_v47 = vld [vmem:[#allocation14 + $0x18] sm:$0xff]  ;;  %v965_v48 = vld [vmem:[#allocation14 + $0x10] sm:$0xff] }
 0x155   :  { %2059 = vmatprep.subr.bf16.mxu0 %v2243_v38  ;;  %v707_v62 = vshrl.u32 %v1807_v56, 16  ;;  %v710_v6 = vshll.u32 %v1807_v56, 16  ;;  %v829_v7 = vshll.u32 %v1815_v54, 16  ;;  %v827_v3 = vshrl.u32 %v1815_v54, 16  ;;  %v967_v46 = vld [vmem:[#allocation14 + $0x20] sm:$0xff]  ;;  %v964_v50 = vld [vmem:[#allocation14 + $0x8] sm:$0xff] }
 0x156   :  { %v701_v1 = vrot.slane %v699_v4, 3  ;;  %v704_v2 = vrot.slane %v702_v59, 4  ;;  %v834_v8 = vshll.u32 %v1816_v5, 16  ;;  %v716_v13 = vshrl.u32 %v1808_v60, 16  ;;  %v963_v51 = vld [vmem:[#allocation14] sm:$0xff] }
 0x157   :  { %v709_v9 = vrot.slane %v707_v62, 3  ;;  %v712_v11 = vrot.slane %v710_v6, 4  ;;  %v831_v12 = vrot.slane %v829_v7, 1  ;;  %v838_v16 = vshrl.u32 %v1816_v5, 16 }
 0x158   :  { %2060 = vmatpush3.bf16.msra.mxu0 %v2243_v38  ;;  %v705_v14 = vor.u32 %v704_v2, %v701_v1  ;;  %v836_v15 = vrot.slane %v834_v8, 1  ;;  %v719_v17 = vshll.u32 %v1808_v60, 16  ;;  %v718_v20 = vrot.slane %v716_v13, 3  ;;  %v974_v38 = vld [vmem:[#allocation14 + $0x58] sm:$0xff] }
 0x159   :  { %v713_v18 = vor.u32 %v712_v11, %v709_v9  ;;  %v832_v19 = vor.u32 %v831_v12, %v827_v3  ;;  %2100 = vmatprep.subr.mxu0 %v2436_v0 }
 0x15a   :  { %v840_v21 = vor.u32 %v838_v16, %v836_v15  ;;  %v721_v22 = vrot.slane %v719_v17, 4 }
 0x15b   :  { %v714_v24 = vsel %vm697_vm5, %v705_v14, %v713_v18  ;;  %v837_v25 = vsel %vm825_vm7, %v832_v19, %v836_v15 }
 0x15c   :  { %2049 = vmatprep.mubr.msk.bf16.mxu1 %vm2892_vm1, %v714_v24  ;;  %2061 = vmatprep.mubr.msk.bf16.mxu0 %vm2892_vm1, %v837_v25  ;;  %v722_v26 = vor.u32 %v721_v22, %v718_v20  ;;  %v845_v28 = vsel %vm825_vm7, %v840_v21, %v844_v63 }
 0x15d   :  { %2062 = vmatmul.mubr.msk.bf16.vlgmr.msra.gmra.mxu0 %vm2892_vm1, %v845_v28 }
 0x15e   :  { %v723_v29 = vsel %vm697_vm5, %v713_v18, %v722_v26  ;;  %2132 = vmatprep.mubr.msk.f32.mxu0 %vm2437_vm0, %v2436_v0  ;;  %2101 = vmatpush3.msra.mxu0 %v978_v32 }
 0x15f   :  { %2050 = vmatmul.mubr.msk.bf16.vlgmr.msra.gmra.mxu1 %vm2892_vm1, %v723_v29  ;;  %2102 = vmatprep.subr.mxu0 %v2436_v0 }
 0x160   :  { %2097 = vmatprep.mubr.msk.f32.mxu1 %vm2437_vm0, %v2436_v0  ;;  %2066 = vmatpush3.msra.mxu1 %v978_v32 }
 0x161   :  { %2067 = vmatprep.subr.mxu1 %v2436_v0  ;;  %2103 = vmatpush3.msra.mxu0 %v977_v33 }
 0x162   :  { %2068 = vmatpush3.msra.mxu1 %v977_v33  ;;  %2104 = vmatprep.subr.mxu0 %v2436_v0 }
 0x163   :  { %2069 = vmatprep.subr.mxu1 %v2436_v0  ;;  %2105 = vmatpush3.msra.mxu0 %v976_v35 }
 0x164   :  { %2070 = vmatpush3.msra.mxu1 %v976_v35  ;;  %2106 = vmatprep.subr.mxu0 %v2436_v0 }
 0x165   :  { %2071 = vmatprep.subr.mxu1 %v2436_v0  ;;  %2107 = vmatpush3.msra.mxu0 %v975_v36 }
 0x166   :  { %2072 = vmatpush3.msra.mxu1 %v975_v36  ;;  %2108 = vmatprep.subr.mxu0 %v2436_v0 }
 0x167   :  { %2073 = vmatprep.subr.mxu1 %v2436_v0  ;;  %2109 = vmatpush3.msra.mxu0 %v974_v38 }
 0x168   :  { %2074 = vmatpush3.msra.mxu1 %v974_v38  ;;  %2110 = vmatprep.subr.mxu0 %v2436_v0 }
 0x169   :  { %2075 = vmatprep.subr.mxu1 %v2436_v0  ;;  %2111 = vmatpush3.msra.mxu0 %v973_v40 }
 0x16a   :  { %2076 = vmatpush3.msra.mxu1 %v973_v40  ;;  %2112 = vmatprep.subr.mxu0 %v2436_v0 }
 0x16b   :  { %2077 = vmatprep.subr.mxu1 %v2436_v0  ;;  %2113 = vmatpush3.msra.mxu0 %v972_v41 }
 0x16c   :  { %2078 = vmatpush3.msra.mxu1 %v972_v41  ;;  %2114 = vmatprep.subr.mxu0 %v2436_v0 }
 0x16d   :  { %2079 = vmatprep.subr.mxu1 %v2436_v0  ;;  %2115 = vmatpush3.msra.mxu0 %v971_v42 }
 0x16e   :  { %2080 = vmatpush3.msra.mxu1 %v971_v42  ;;  %2116 = vmatprep.subr.mxu0 %v2436_v0 }
 0x16f   :  { %2081 = vmatprep.subr.mxu1 %v2436_v0  ;;  %2117 = vmatpush3.msra.mxu0 %v970_v43 }
 0x170   :  { %2082 = vmatpush3.msra.mxu1 %v970_v43  ;;  %2118 = vmatprep.subr.mxu0 %v2436_v0 }
 0x171   :  { %2083 = vmatprep.subr.mxu1 %v2436_v0  ;;  %2119 = vmatpush3.msra.mxu0 %v969_v44 }
 0x172   :  { %2084 = vmatpush3.msra.mxu1 %v969_v44  ;;  %2120 = vmatprep.subr.mxu0 %v2436_v0 }
 0x173   :  { %2085 = vmatprep.subr.mxu1 %v2436_v0  ;;  %2121 = vmatpush3.msra.mxu0 %v968_v45 }
 0x174   :  { %2086 = vmatpush3.msra.mxu1 %v968_v45  ;;  %2122 = vmatprep.subr.mxu0 %v2436_v0  ;;  %v2244_v45 = vld [vmem:[#allocation10 + $0x78] sm:$0xff]  }
 0x175   :  { %2087 = vmatprep.subr.mxu1 %v2436_v0  ;;  %2123 = vmatpush3.msra.mxu0 %v967_v46 }
 0x176   :  { %2088 = vmatpush3.msra.mxu1 %v967_v46  ;;  %2124 = vmatprep.subr.mxu0 %v2436_v0  ;;  %v2245_v46 = vld [vmem:[#allocation10 + $0x70] sm:$0xff]  }
 0x177   :  { %2089 = vmatprep.subr.mxu1 %v2436_v0  ;;  %2125 = vmatpush3.msra.mxu0 %v966_v47 }
 0x178   :  { %2090 = vmatpush3.msra.mxu1 %v966_v47  ;;  %2126 = vmatprep.subr.mxu0 %v2436_v0  ;;  %v2246_v47 = vld [vmem:[#allocation10 + $0x68] sm:$0xff]  }
 0x179   :  { %2091 = vmatprep.subr.mxu1 %v2436_v0  ;;  %2127 = vmatpush3.msra.mxu0 %v965_v48 }
 0x17a   :  { %2092 = vmatpush3.msra.mxu1 %v965_v48  ;;  %2128 = vmatprep.subr.mxu0 %v2436_v0  ;;  %v2247_v48 = vld [vmem:[#allocation10 + $0x60] sm:$0xff]  }
 0x17b   :  { %2093 = vmatprep.subr.mxu1 %v2436_v0  ;;  %2129 = vmatpush3.msra.mxu0 %v964_v50 }
 0x17c   :  { %2094 = vmatpush3.msra.mxu1 %v964_v50  ;;  %2130 = vmatprep.subr.mxu0 %v2436_v0  ;;  %v2248_v50 = vld [vmem:[#allocation10 + $0x58] sm:$0xff]  }
 0x17d   :  { %2095 = vmatprep.subr.mxu1 %v2436_v0  ;;  %2131 = vmatpush3.msra.mxu0 %v963_v51  ;;  %v1824_v0 = vld [vmem:[%s2882_s4] ss:$0 sm:$0xff] }
 0x17e   :  { %2096 = vmatpush3.msra.mxu1 %v963_v51  ;;  %v2249_v51 = vld [vmem:[#allocation10 + $0x38] sm:$0xff]  }
 0x17f   :  { %2135 = vmatprep.subr.bf16.mxu1 %v2244_v45  ;;  %2155 = vmatprep.subr.bf16.mxu0 %v2249_v51 }
 0x20b   :  { %v2039_v52 = vpop.f32.mrf.mxu0 }
 0x20d   :  { %v669_v53 = vpop.f32.mrf.mxu0 }
 0x20f   :  { %v2040_v54 = vpop.f32.mrf.mxu0 }
 0x211   :  { %v672_v56 = vpop.f32.mrf.mxu0 }
 0x21d   :  { %v2063_v57 = vpop.f32.mrf.mxu0 }
 0x21f   :  { %v2051_v58 = vpop.f32.mrf.mxu1  ;;  %v910_v4 = vpop.f32.mrf.mxu0 }
 0x220   :  { %v797_v60 = vadd.f32 %v2051_v58, %v2039_v52  ;;  %v2250_v52 = vld [vmem:[#allocation10 + $0x50] sm:$0xff]   ;;  %v2255_v58 = vld [vmem:[#allocation10 + $0x20] sm:$0xff]  }
 0x221   :  { %v788_v59 = vpop.f32.mrf.mxu1  ;;  %v2064_v6 = vpop.f32.mrf.mxu0 }
 0x222   :  { %v789_v5 = vadd.f32 %v788_v59, %v669_v53  ;;  %v927_v2 = vadd.f32 %v2063_v57, %v797_v60  ;;  %v2251_v53 = vld [vmem:[#allocation10 + $0x30] sm:$0xff]   ;;  %v2254_v57 = vld [vmem:[#allocation10 + $0x40] sm:$0xff]   ;;  %v2257_v59 = vld [vmem:[#allocation10 + $0x18] sm:$0xff]  }
 0x223   :  { %v2052_v62 = vpop.f32.mrf.mxu1  ;;  %v913_v8 = vpop.f32.mrf.mxu0  ;;  %v2259_v60 = vld [vmem:[#allocation10 + $0x10] sm:$0xff]  }
 0x224   :  { %v925_v7 = vadd.f32 %v910_v4, %v789_v5  ;;  %v800_v63 = vadd.f32 %v2052_v62, %v2040_v54  ;;  %v2796_v13 = vadd.f32 %v1824_v0, %v927_v2  ;;  %v2252_v54 = vld [vmem:[#allocation10 + $0x48] sm:$0xff]   ;;  %v2814_v4 = vld [vmem:[#allocation10 + $0xb8] sm:$0xff]   ;;  %v2263_v62 = vld [vmem:[#allocation10] sm:$0xff]  }
 0x225   :  { %v791_v1 = vpop.f32.mrf.mxu1  ;;  %v2261_v5 = vld [vmem:[#allocation10 + $0x8] sm:$0xff]  }
 0x226   :  { %v792_v3 = vadd.f32 %v791_v1, %v672_v56  ;;  %v2794_v9 = vadd.f32 %v1824_v0, %v925_v7  ;;  %v928_v11 = vadd.f32 %v2064_v6, %v800_v63  ;;  %v952_v19 = vmul.f32 %v2796_v13, %v2796_v13  ;;  %v2253_v56 = vld [vmem:[#allocation10 + $0x28] sm:$0xff]   ;;  %v2817_v6 = vld [vmem:[#allocation11 + $0x38] sm:$0xff] }
 0x228   :  { %v926_v12 = vadd.f32 %v913_v8, %v792_v3  ;;  %v950_v15 = vmul.f32 %v2794_v9, %v2794_v9  ;;  %v2802_v16 = vadd.f32 %v1824_v0, %v928_v11 }
 0x22a   :  { %v2798_v14 = vadd.f32 %v1824_v0, %v926_v12  ;;  %v953_v22 = vmul.f32 %v2802_v16, %v2802_v16 }
 0x22c   :  { %v941_v17 = vadd.f32 %v2798_v14, %v2794_v9  ;;  %v951_v18 = vmul.f32 %v2798_v14, %v2798_v14 }
 0x22e   :  { %v942_v20 = vadd.f32 %v941_v17, %v2796_v13  ;;  %v954_v21 = vadd.f32 %v951_v18, %v950_v15  ;;  %v939_v17 = vld [vmem:[%s2887_s9] sm:$0x1] }
 0x230   :  { %v943_v24 = vadd.f32 %v942_v20, %v2802_v16  ;;  %v955_v25 = vadd.f32 %v954_v21, %v952_v19  ;;  %v940_v20 = vld [vmem:[%s2888_s10] sm:$0x1] }
 0x232   :  { %v944_v26 = vrot.slane %v943_v24, 4  ;;  %v956_v28 = vadd.f32 %v955_v25, %v953_v22 }
 0x234   :  { %v945_v29 = vadd.f32 %v944_v26, %v943_v24  ;;  %v957_v32 = vrot.slane %v956_v28, 4 }
 0x236   :  { %v946_v33 = vrot.slane %v945_v29, 2  ;;  %v958_v35 = vadd.f32 %v957_v32, %v956_v28 }
 0x238   :  { %v947_v36 = vadd.f32 %v946_v33, %v945_v29  ;;  %v959_v38 = vrot.slane %v958_v35, 2 }
 0x23a   :  { %v948_v40 = vrot.slane %v947_v36, 1  ;;  %v960_v41 = vadd.f32 %v959_v38, %v958_v35 }
 0x23c   :  { %v949_v42 = vadd.f32 %v948_v40, %v947_v36  ;;  %v961_v43 = vrot.slane %v960_v41, 1 }
 0x23e   :  { %2098 = vmatmul.mubr.f32.vlgmr.msra.gmra.mxu1 %v949_v42  ;;  %v962_v44 = vadd.f32 %v961_v43, %v960_v41 }
 0x23f   :  { %2136 = vmatpush3.bf16.msra.mxu1 %v2244_v45 }
 0x240   :  { %2133 = vmatmul.mubr.f32.vlgmr.msra.gmra.mxu0 %v962_v44  ;;  %2137 = vmatprep.subr.bf16.mxu1 %v2245_v46 }
 0x241   :  { %2156 = vmatpush3.bf16.msra.mxu0 %v2249_v51  ;;  %v2260_v51 = vld [vmem:[#allocation10 + $0xa8] sm:$0xff]  }
 0x242   :  { %2157 = vmatprep.subr.bf16.mxu0 %v2251_v53 }
 0x243   :  { %2138 = vmatpush3.bf16.msra.mxu1 %v2245_v46 }
 0x244   :  { %2139 = vmatprep.subr.bf16.mxu1 %v2246_v47 }
 0x245   :  { %2158 = vmatpush3.bf16.msra.mxu0 %v2251_v53  ;;  %v2262_v53 = vld [vmem:[#allocation10 + $0xa0] sm:$0xff]  }
 0x246   :  { %2159 = vmatprep.subr.bf16.mxu0 %v2253_v56 }
 0x247   :  { %2140 = vmatpush3.bf16.msra.mxu1 %v2246_v47 }
 0x248   :  { %2141 = vmatprep.subr.bf16.mxu1 %v2247_v48 }
 0x249   :  { %2160 = vmatpush3.bf16.msra.mxu0 %v2253_v56 }
 0x24a   :  { %2161 = vmatprep.subr.bf16.mxu0 %v2255_v58 }
 0x24b   :  { %2142 = vmatpush3.bf16.msra.mxu1 %v2247_v48  ;;  %v2258_v48 = vld [vmem:[#allocation10 + $0xb0] sm:$0xff]  }
 0x24c   :  { %2143 = vmatprep.subr.bf16.mxu1 %v2248_v50 }
 0x24d   :  { %2162 = vmatpush3.bf16.msra.mxu0 %v2255_v58 }
 0x24e   :  { %2163 = vmatprep.subr.bf16.mxu0 %v2257_v59 }
 0x24f   :  { %2144 = vmatpush3.bf16.msra.mxu1 %v2248_v50  ;;  %v1182_v50 = vld [vmem:[#allocation3] sm:$0x8] }
 0x250   :  { %2145 = vmatprep.subr.bf16.mxu1 %v2250_v52 }
 0x251   :  { %2164 = vmatpush3.bf16.msra.mxu0 %v2257_v59 }
 0x252   :  { %2165 = vmatprep.subr.bf16.mxu0 %v2259_v60 }
 0x253   :  { %2146 = vmatpush3.bf16.msra.mxu1 %v2250_v52  ;;  %v1187_v52 = vsel %vm513_vm2, %v1182_v50, 0 }
 0x254   :  { %2147 = vmatprep.subr.bf16.mxu1 %v2252_v54 }
 0x255   :  { %2166 = vmatpush3.bf16.msra.mxu0 %v2259_v60 }
 0x256   :  { %2167 = vmatprep.subr.bf16.mxu0 %v2261_v5 }
 0x257   :  { %2148 = vmatpush3.bf16.msra.mxu1 %v2252_v54 }
 0x258   :  { %2149 = vmatprep.subr.bf16.mxu1 %v2254_v57 }
 0x259   :  { %2168 = vmatpush3.bf16.msra.mxu0 %v2261_v5 }
 0x25a   :  { %2169 = vmatprep.subr.bf16.mxu0 %v2263_v62 }
 0x25b   :  { %2150 = vmatpush3.bf16.msra.mxu1 %v2254_v57 }
 0x25c   :  { %2175 = vmatprep.subr.bf16.mxu1 %v2814_v4 }
 0x25d   :  { %2170 = vmatpush3.bf16.msra.mxu0 %v2263_v62 }
 0x25e   :  { %2195 = vmatprep.subr.mxu0 %v2817_v6 }
 0x2fe   :  { %v1045_v7 = vpop.f32.mrf.mxu1 }
 0x2ff   :  { %v1049_v63 = vmul.f32 0.001953125, %v1045_v7 }
 0x300   :  { %v2099_v1 = vpop.f32.mrf.mxu1  ;;  %v1116_v2 = vpop.f32.mrf.mxu0 }
 0x301   :  { %v1121_v3 = vmul.f32 %v1049_v63, %v1049_v63  ;;  %v1120_v0 = vmul.f32 0.001953125, %v1116_v2 }
 0x302   :  { %v2134_v8 = vpop.f32.mrf.mxu0 }
 0x303   :  { %v1122_v11 = vsub.f32 %v1120_v0, %v1121_v3  ;;  %v2264_v8 = vld [vmem:[#allocation10 + $0x98] sm:$0xff]  }
 0x305   :  { %v1123_v12 = vmax.f32 %v1122_v11, 0.0 }
 0x307   :  { %v1124_v15 = vadd.f32 1e-05, %v1123_v12 }
 0x309   :  { %2270 = vrsqrt.f32 %v1124_v15 }
 0x316   :  { %v2271_v18 = vpop.eup %2270 }
 0x317   :  { %v1126_v19 = vmul.f32 %v2271_v18, %v939_v17 }
 0x319   :  { %v1127_v21 = vmul.f32 %v1126_v19, %v1049_v63  ;;  %v1133_v22 = vrot.slane %v1126_v19, %v2629_v27 }
 0x31b   :  { %v1128_v24 = vsub.f32 %v940_v20, %v1127_v21  ;;  %v1135_v25 = vmul.f32 %v1133_v22, %v2794_v9  ;;  %v1136_v26 = vmul.f32 %v1133_v22, %v2798_v14  ;;  %v1137_v28 = vmul.f32 %v1133_v22, %v2796_v13 }
 0x31c   :  { %v1138_v32 = vmul.f32 %v1133_v22, %v2802_v16 }
 0x31d   :  { %v1143_v29 = vrot.slane %v1128_v24, %v2629_v27 }
 0x31f   :  { %v1145_v33 = vadd.f32 %v1143_v29, %v1135_v25  ;;  %v1146_v35 = vadd.f32 %v1143_v29, %v1136_v26  ;;  %v1147_v36 = vadd.f32 %v1143_v29, %v1137_v28  ;;  %v1148_v38 = vadd.f32 %v1143_v29, %v1138_v32  ;;  %v1196_v26 = vld [vmem:[#allocation3 + $0x14] sm:$0x1] }
 0x321   :  { %vm1149_vm0 = vcmp.gt.f32.partialorder %v1145_v33, 0.0  ;;  %vm1150_vm9 = vcmp.gt.f32.partialorder %v1146_v35, 0.0  ;;  %vm1151_vm10 = vcmp.gt.f32.partialorder %v1147_v36, 0.0  ;;  %v1153_v40 = vmul.f32 0.3, %v1145_v33 }
 0x322   :  { %v1154_v41 = vmul.f32 0.3, %v1146_v35  ;;  %v1155_v42 = vmul.f32 0.3, %v1147_v36  ;;  %vm1152_vm1 = vcmp.gt.f32.partialorder %v1148_v38, 0.0 }
 0x323   :  { %v1157_v9 = vsel %vm1149_vm0, %v1145_v33, %v1153_v40  ;;  %v1156_v43 = vmul.f32 0.3, %v1148_v38  ;;  %v2265_v33 = vld [vmem:[#allocation10 + $0x90] sm:$0xff]  }
 0x324   :  { %v1158_v14 = vsel %vm1150_vm9, %v1146_v35, %v1154_v41  ;;  %v1159_v44 = vsel %vm1151_vm10, %v1147_v36, %v1155_v42  ;;  %v1869_v13 = vpack.c.bf16 %v1157_v9, %v1157_v9  ;;  %v1201_v41 = vsel %vm2663_vm8, %v1196_v26, 0 }
 0x325   :  { %v1161_v45 = vpack.c.bf16 %v1158_v14, %v1157_v9  ;;  %v1876_v27 = vpack.c.bf16 %v1159_v44, %v1158_v14  ;;  %v1160_v46 = vsel %vm1152_vm1, %v1148_v38, %v1156_v43  ;;  %v2266_v43 = vld [vmem:[#allocation10 + $0x88] sm:$0xff]   ;;  %v1850_v14 = vcombine.low %v1201_v41, %v1201_v41 }
 0x326   :  { %1177 = vst [vmem:[#allocation3 + $0x4] sm:$0xf] %v1869_v13  ;;  %v1162_v16 = vpack.c.bf16 %v1160_v46, %v1159_v44  ;;  %v1872_v47 = vpack.c.bf16 %v1160_v46, %v1160_v46  ;;  %v1639_v13 = vld [vmem:[#allocation11 + $0x30] sm:$0xff]  ;;  %v2272_v46 = vld [vmem:[#allocation5] sm:$0xff]  ;;  %vm2909_vm1 = vcmask 523264  }
 0x327   :  { %1878 = vst [vmem:[#allocation3 + $0x8] sm:$0xff] %v1876_v27   ;;  %2151 = vmatprep.mubr.bf16.mxu1 %v1161_v45  ;;  %v1638_v45 = vld [vmem:[#allocation11 + $0x28] sm:$0xff]  ;;  %v1516_v27 = vshll.u32 %v1850_v14, 16  ;;  %vm2910_vm8 = vmmov %vm2909_vm1 }
 0x328   :  { %1180 = vst [vmem:[#allocation3 + $0x10] sm:$0xf] %v1872_v47  ;;  %2152 = vmatmul.mubr.bf16.vlgmr.msra.gmra.mxu1 %v1162_v16  ;;  %v1637_v16 = vld [vmem:[#allocation11 + $0x20] sm:$0xff]  ;;  %vm2911_vm2 = vmmov %vm2909_vm1 }
 0x329   :  { %2176 = vmatpush3.bf16.msra.mxu1 %v2814_v4 }
 0x32a   :  { %2177 = vmatprep.subr.bf16.mxu1 %v2258_v48 }
 0x32d   :  { %2178 = vmatpush3.bf16.msra.mxu1 %v2258_v48  ;;  %v1183_v54 = vld [vmem:[#allocation3 + $0x4] sm:$0xf]  ;;  %v1636_v48 = vld [vmem:[#allocation11 + $0x18] sm:$0xff] }
 0x32e   :  { %v1192_v56 = vld [vmem:[#allocation3 + $0x4] sm:$0xf]  ;;  %2179 = vmatprep.subr.bf16.mxu1 %v2260_v51  ;;  %v1184_v57 = vld [vmem:[#allocation3 + $0x8] sm:$0xf]  ;;  %v1185_v58 = vld [vmem:[#allocation3 + $0xc] sm:$0xf] }
 0x32f   :  { %v1188_v59 = vsel %vm2713_vm11, %v1183_v54, 0  ;;  %v1197_v60 = vsel %vm578_vm13, %v1192_v56, 0  ;;  %v1189_v4 = vsel %vm2717_vm12, %v1184_v57, 0  ;;  %v1190_v23 = vsel %vm2723_vm15, %v1185_v58, 0  ;;  %v1193_v62 = vld [vmem:[#allocation3 + $0x8] sm:$0xf]  ;;  %vm2912_vm11 = vmmov %vm2909_vm1 }
 0x330   :  { %v1837_v5 = vcombine.low %v1187_v52, %v1188_v59  ;;  %v1194_v7 = vld [vmem:[#allocation3 + $0xc] sm:$0xf]  ;;  %v1838_v63 = vcombine.low %v1189_v4, %v1190_v23  ;;  %v1195_v1 = vld [vmem:[#allocation3 + $0x10] sm:$0xf]  ;;  %v1198_v2 = vsel %vm579_vm14, %v1193_v62, 0  ;;  %v1634_v52 = vld [vmem:[#allocation11 + $0x8] sm:$0xff] }
 0x331   :  { %v1199_v49 = vsel %vm580_vm4, %v1194_v7, 0  ;;  %v1186_v3 = vld [vmem:[#allocation3 + $0x10] sm:$0xf]  ;;  %2180 = vmatpush3.bf16.msra.mxu1 %v2260_v51  ;;  %v1200_v30 = vsel %vm581_vm6, %v1195_v1, 0  ;;  %v1848_v39 = vcombine.low %v1197_v60, %v1198_v2  ;;  %v1518_v51 = vrot.slane %v1516_v27, 1  ;;  %v1633_v54 = vld [vmem:[#allocation11] sm:$0xff]  ;;  %vm2913_vm12 = vmmov %vm2909_vm1 }
 0x332   :  { %v1346_v61 = vshrl.u32 %v1837_v5, 16  ;;  %v1349_v0 = vshll.u32 %v1837_v5, 16  ;;  %2181 = vmatprep.subr.bf16.mxu1 %v2262_v53  ;;  %v1354_v11 = vshrl.u32 %v1838_v63, 16  ;;  %v1357_v12 = vshll.u32 %v1838_v63, 16  ;;  %v2273_v56 = vld [vmem:[#allocation5 + $0x8] sm:$0xff]  ;;  %v2274_v57 = vld [vmem:[#allocation5 + $0x10] sm:$0xff]  ;;  %vm2914_vm13 = vmmov %vm2909_vm1 }
 0x333   :  { %v1849_v15 = vcombine.low %v1199_v49, %v1200_v30  ;;  %v1191_v31 = vsel %vm517_vm3, %v1186_v3, 0  ;;  %v1503_v34 = vshll.u32 %v1848_v39, 16  ;;  %v1501_v37 = vshrl.u32 %v1848_v39, 16  ;;  %v2275_v58 = vld [vmem:[#allocation5 + $0x18] sm:$0xff]  ;;  %v1859_v39 = vld [vmem:[%s2883_s5] ss:$0 sm:$0xff] }
 0x334   :  { %v1348_v17 = vrot.slane %v1346_v61, 3  ;;  %v1351_v18 = vrot.slane %v1349_v0, 4  ;;  %v1356_v19 = vrot.slane %v1354_v11, 3  ;;  %v1359_v20 = vrot.slane %v1357_v12, 4  ;;  %v1860_v11 = vld [vmem:[%s2884_s6] ss:$0 sm:$0xff] }
 0x335   :  { %v1508_v21 = vshll.u32 %v1849_v15, 16  ;;  %v1839_v22 = vcombine.low %v1191_v31, %v1191_v31  ;;  %2182 = vmatpush3.bf16.msra.mxu1 %v2262_v53  ;;  %v1505_v25 = vrot.slane %v1503_v34, 1  ;;  %v1512_v47 = vshrl.u32 %v1849_v15, 16  ;;  %s2440_s5 = smov [#allocation16]  }
 0x336   :  { %v1352_v24 = vor.u32 %v1351_v18, %v1348_v17  ;;  %2183 = vmatprep.subr.bf16.mxu1 %v2264_v8  ;;  %v1360_v28 = vor.u32 %v1359_v20, %v1356_v19  ;;  %s1779_s6 = sshll.u32 %s2440_s5, 4  ;;  %s1780_s6 = int_to_ptr.vmem [resolvable:$true] %s1779_s6 }
 0x337   :  { %v1363_v29 = vshrl.u32 %v1839_v22, 16  ;;  %v1366_v32 = vshll.u32 %v1839_v22, 16  ;;  %v1506_v35 = vor.u32 %v1505_v25, %v1501_v37  ;;  %v1510_v55 = vrot.slane %v1508_v21, 1  ;;  %s2396_s14 = scalar_lea.vmem %s1780_s6, 256  ;;  %p2401_p3 = scmp.lt.s32.totalorder %s1780_s6, %s1780_s6 }
 0x338   :  { %v1361_v36 = vsel %vm697_vm5, %v1352_v24, %v1360_v28  ;;  %p2397_p2 = scmp.ne.s32.totalorder %s1780_s6, %s2396_s14  ;;  %p2402_p4 = scmp.lt.s32.totalorder %s2396_s14, %s2396_s14 }
 0x339   :  { %v1365_v38 = vrot.slane %v1363_v29, 3  ;;  %v1368_v40 = vrot.slane %v1366_v32, 4  ;;  %2184 = vmatpush3.bf16.msra.mxu1 %v2264_v8  ;;  %2171 = vmatprep.mubr.bf16.mxu0 %v1361_v36  ;;  %v1511_v42 = vsel %vm825_vm7, %v1506_v35, %v1510_v55  ;;  %v1514_v50 = vor.u32 %v1512_v47, %v1510_v55 }
 0x33a   :  { %2191 = vmatprep.mubr.bf16.mxu1 %v1511_v42  ;;  %2185 = vmatprep.subr.bf16.mxu1 %v2265_v33  ;;  %p2403_p5 = por %p2402_p4, %p2401_p3 }
 0x33b   :  { %v1369_v9 = vor.u32 %v1368_v40, %v1365_v38  ;;  %v1519_v53 = vsel %vm825_vm7, %v1514_v50, %v1518_v51 }
 0x33c   :  { %p2404_p6 = pnand %p2403_p5, %p2397_p2 }
 0x33d   :  { %v1370_v44 = vsel %vm697_vm5, %v1360_v28, %v1369_v9  ;;  %2186 = vmatpush3.bf16.msra.mxu1 %v2265_v33 }
 0x33e   :  { %2172 = vmatmul.mubr.bf16.vlgmr.msra.gmra.mxu0 %v1370_v44  ;;  %2187 = vmatprep.subr.bf16.mxu1 %v2266_v43 }
 0x33f   :  { %2196 = vmatpush3.msra.mxu0 %v2817_v6  ;;  %2211 = vmatprep.mubr.msk.f32.mxu0 %vm2909_vm1, %v2272_v46  ;;  %v1635_v6 = vld [vmem:[#allocation11 + $0x10] sm:$0xff] }
 0x340   :  { %2197 = vmatprep.subr.mxu0 %v1639_v13 }
 0x341   :  { %2198 = vmatpush3.msra.mxu0 %v1639_v13  ;;  %2188 = vmatpush3.bf16.msra.mxu1 %v2266_v43 }
 0x342   :  { %2199 = vmatprep.subr.mxu0 %v1638_v45  ;;  %2189 = vmatprep.subr.bf16.mxu1 %v2267_v10 }
 0x343   :  { %2200 = vmatpush3.msra.mxu0 %v1638_v45 }
 0x344   :  { %2201 = vmatprep.subr.mxu0 %v1637_v16 }
 0x345   :  { %2202 = vmatpush3.msra.mxu0 %v1637_v16  ;;  %2190 = vmatpush3.bf16.msra.mxu1 %v2267_v10 }
 0x346   :  { %2203 = vmatprep.subr.mxu0 %v1636_v48 }
 0x347   :  { %2204 = vmatpush3.msra.mxu0 %v1636_v48 }
 0x348   :  { %2205 = vmatprep.subr.mxu0 %v1635_v6  ;;  %2192 = vmatmul.mubr.bf16.vlgmr.msra.gmra.mxu1 %v1519_v53 }
 0x349   :  { %2206 = vmatpush3.msra.mxu0 %v1635_v6 }
 0x34a   :  { %2207 = vmatprep.subr.mxu0 %v1634_v52 }
 0x34b   :  { %2208 = vmatpush3.msra.mxu0 %v1634_v52 }
 0x34c   :  { %2209 = vmatprep.subr.mxu0 %v1633_v54 }
 0x34d   :  { %2210 = vmatpush3.msra.mxu0 %v1633_v54 }
 0x34e   :  { %2212 = vmatmul.mubr.msk.f32.vlgmr.msra.gmra.mxu0 %vm2910_vm8, %v2273_v56 }
 0x34f   :  { %2214 = vmatprep.mubr.msk.f32.mxu0 %vm2911_vm2, %v2274_v57 }
 0x352   :  { %2215 = vmatmul.mubr.msk.f32.gmra.mxu0 %vm2912_vm11, %v2275_v58 }
 0x3e8   :  { %v2153_v59 = vpop.f32.mrf.mxu1 }
 0x3ea   :  { %v1317_v60 = vpop.f32.mrf.mxu1 }
 0x3ec   :  { %v2154_v23 = vpop.f32.mrf.mxu1 }
 0x3ee   :  { %v1320_v62 = vpop.f32.mrf.mxu1 }
 0x3fe   :  { %v2173_v4 = vpop.f32.mrf.mxu0 }
 0x3ff   :  { %v1464_v15 = vadd.f32 %v2173_v4, %v2153_v59 }
 0x400   :  { %v1455_v5 = vpop.f32.mrf.mxu0 }
 0x401   :  { %v1456_v1 = vadd.f32 %v1455_v5, %v1317_v60 }
 0x402   :  { %v2174_v7 = vpop.f32.mrf.mxu0 }
 0x403   :  { %v1467_v3 = vadd.f32 %v2174_v7, %v2154_v23 }
 0x404   :  { %v1458_v2 = vpop.f32.mrf.mxu0 }
 0x405   :  { %v1459_v30 = vadd.f32 %v1458_v2, %v1320_v62 }
 0x408   :  { %v2193_v63 = vpop.f32.mrf.mxu1 }
 0x409   :  { %v1621_v19 = vadd.f32 %v2193_v63, %v1464_v15 }
 0x40a   :  { %v1604_v49 = vpop.f32.mrf.mxu1 }
 0x40b   :  { %v1619_v61 = vadd.f32 %v1604_v49, %v1456_v1  ;;  %v1631_v32 = vadd.f32 %v1859_v39, %v1621_v19 }
 0x40c   :  { %v2194_v0 = vpop.f32.mrf.mxu1 }
 0x40d   :  { %v1622_v12 = vadd.f32 %v2194_v0, %v1467_v3  ;;  %v1629_v31 = vadd.f32 %v1859_v39, %v1619_v61 }
 0x40e   :  { %v2213_v8 = vpop.f32.mrf.mxu0  ;;  %v1607_v17 = vpop.f32.mrf.mxu1 }
 0x40f   :  { %v1620_v34 = vadd.f32 %v1607_v17, %v1459_v30  ;;  %v1632_v20 = vadd.f32 %v1859_v39, %v1622_v12  ;;  %v1732_v22 = vadd.f32 %v2213_v8, %v1860_v11 }
 0x410   :  { %v1726_v18 = vpop.f32.mrf.mxu0 }
 0x411   :  { %v1727_v21 = vadd.f32 %v1860_v11, %v1726_v18  ;;  %v1630_v24 = vadd.f32 %v1859_v39, %v1620_v34 }
 0x412   :  { %v2216_v37 = vpop.f32.mrf.mxu0 }
 0x413   :  { %v1745_v25 = vadd.f32 %v1727_v21, %v1629_v31  ;;  %v1742_v26 = vadd.f32 %v2216_v37, %v1860_v11  ;;  %v1746_v28 = vadd.f32 %v1732_v22, %v1630_v24 }
 0x414   :  { %v1736_v29 = vpop.f32.mrf.mxu0 }
 0x415   :  { %1749 = vst [vmem:[#allocation4] sm:$0xff] %v1745_v25  ;;  %v1748_v33 = vadd.f32 %v1742_v26, %v1632_v20  ;;  %v1737_v35 = vadd.f32 %v1860_v11, %v1736_v29  ;;  %1750 = vst [vmem:[#allocation4 + $0x8] sm:$0xff] %v1746_v28 }
 0x417   :  { %1752 = vst [vmem:[#allocation4 + $0x18] sm:$0xff] %v1748_v33  ;;  %v1747_v55 = vadd.f32 %v1737_v35, %v1631_v32 }
 0x419   :  { %1751 = vst [vmem:[#allocation4 + $0x10] sm:$0xff] %v1747_v55 }
 0x41c   :  { %v1753_v36 = vld [vmem:[#allocation4] ss:$2 sm:$0xff]  ;;  %v1757_v38 = vld [vmem:[#allocation4 + $0x1] ss:$2 sm:$0xff] }
 0x41d   :  { %v1760_v40 = vmax.f32 %v1753_v36, %v1757_v38 }
 0x41f   :  { %1764 = vrot.lane.b32.xlu0 %v1760_v40, %s2427_s28 }
 0x420   :  { %v1755_v41 = vld [vmem:[#allocation4 + $0x10] ss:$2 sm:$0xff]  ;;  %v1759_v42 = vld [vmem:[#allocation4 + $0x11] ss:$2 sm:$0xff] }
 0x421   :  { %v1761_v9 = vmax.f32 %v1755_v41, %v1759_v42 }
 0x423   :  { %1766 = vrot.lane.b32.xlu0 %v1761_v9, %s2427_s28 }
 0x491   :  { %v1765_v43 = vpop.permute.xlu0 %1764 }
 0x492   :  { %v1770_v14 = vmax.f32 %v1760_v40, %v1765_v43 }
 0x494   :  { %1772 = vst.msk [vmem:[#allocation16] sm:$0xff] %vm2913_vm12, %v1770_v14 }
 0x495   :  { %v1767_v44 = vpop.permute.xlu0 %1766 }
 0x496   :  { %v1771_v13 = vmax.f32 %v1761_v9, %v1767_v44 }
 0x498   :  { %1773 = vst.msk [vmem:[#allocation16 + $0x8] sm:$0xff] %vm2914_vm13, %v1771_v13 }
 0x499   :  { %2407 = shalt.err (!%p2404_p6)
}
 0x49a   :  { %1785 = dma.vmem_to_hbm [thread:$0]  %s1780_s6, 256, %s2891_s13, [#allocation7], %s2431_s20, %s2431_s20, %s2432_s21  }
 0x49b   :  { %2424 = dma.done.wait [#allocation7], 256  }
 0x49c   :  { %2425 = vsyncadd [#allocation7], 4294967040 }
 0x49d   :  { %1789 = vsyncpa [#allocation6], 1 }
 0x49e   :  { %1790 = vsyncpa [#allocation9], 1 }
 0x49f   :  { %1791 = vsyncpa [#allocation12], 1 }
 0x4a0   :  { %1792 = vsyncpa [#allocation15], 1 }
 0x4a1   :  { %1793 = vsyncpa [#allocation7], 1 }

</bundles_post_ra>
